<compile_context>
chip_gen: v6e
topology: v6e:2x2x1
jax: 0.10.0
libtpu: 0.0.40
codegen_flags: <defaults>
</compile_context>

<pallas_src>
import jax
import jax.numpy as jnp
import numpy as np
from jax.experimental import pallas as pl
from jax.experimental.pallas import tpu as pltpu


# ----------------------------------------------------------------------------
# Synthetic sub-module configuration
# ----------------------------------------------------------------------------
PATCH = 8               # spatial patch size (tubelet size = 1)
FEAT = 32               # encoder feature size
NUM_CLASSES = 8         # segmentation output channels
SPATIAL_PER_FRAME = 4   # spatial patches per frame at H = W = 16
LANES = 128             # TPU lane width; SPATIAL_PER_FRAME * FEAT == 128
NUM_PREDICT = 11        # number_of_frames_to_predict
PADDED_SPATIAL = 100    # pad_patches target (10 x 10 grid downstream)


def make_params(key, color_channels):
    patch_dim = color_channels * PATCH * PATCH
    k1, k2, k3, k4, k5, k6 = jax.random.split(key, 6)
    return {
        # encoder: patch-embedding linear (patch_dim -> FEAT)
        "enc_w": jax.random.normal(k1, (patch_dim, FEAT), jnp.float32) / np.sqrt(patch_dim),
        "enc_b": jax.random.normal(k2, (FEAT,), jnp.float32) * 0.02,
        # predictor: FEAT -> FEAT linear
        "pred_w": jax.random.normal(k3, (FEAT, FEAT), jnp.float32) / np.sqrt(FEAT),
        "pred_b": jax.random.normal(k4, (FEAT,), jnp.float32) * 0.02,
        # segmentation: 1x1 conv, in_ch = 10*FEAT, out_ch = NUM_CLASSES
        "seg_w": jax.random.normal(k5, (10 * FEAT, NUM_CLASSES), jnp.float32) / np.sqrt(10 * FEAT),
        "seg_b": jax.random.normal(k6, (NUM_CLASSES,), jnp.float32) * 0.02,
    }


# ----------------------------------------------------------------------------
# The single fused Pallas kernel
#   patches_ref : (G, 4*patch_dim)  4 spatial patches packed per (clip, frame) row
#   enc_w_ref   : (4*patch_dim, 128) block-diagonal encoder projection
#   pred_w_ref  : (128, 128)        block-diagonal predictor weight
#   seg_w_ref   : (128, 128)        seg 1x1-conv weight, out channels padded 8->128
#   out_ref     : (G, 10, 128)      segmentation logits (h2 axis in the middle)
# Everything fits in VMEM (< 1 MiB total), so no grid / tiling is needed.
# ----------------------------------------------------------------------------
def _fused_inference_kernel(patches_ref, enc_w_ref, enc_b_ref,
                            pred_w_ref, pred_b_ref,
                            seg_w_ref, seg_b_ref, out_ref):
    # --- encoder: per-patch linear (4 patches per row via block-diag weight) --
    a = jnp.dot(patches_ref[...], enc_w_ref[...],
                preferred_element_type=jnp.float32) + enc_b_ref[...]

    # --- predictor applied 11x; activation stays resident in vregs/VMEM ------
    pred_w = pred_w_ref[...]
    pred_b = jnp.broadcast_to(pred_b_ref[...], a.shape)   # hoisted out of loop

    def body(_, acc):
        return jnp.dot(acc, pred_w, preferred_element_type=jnp.float32) + pred_b

    a = jax.lax.fori_loop(0, NUM_PREDICT, body, a, unroll=True)

    # --- pad_patches + 1x1-conv segmentation ---------------------------------
    # Zero-padded patches contribute exactly 0 to the channel matmul, so only
    # the h2 == 0 spatial column needs the matmul; the other 9 are bias-only.
    seg_b = seg_b_ref[...]                                          # (1, 128)
    active = jnp.dot(a, seg_w_ref[...],
                     preferred_element_type=jnp.float32) + seg_b    # (G, 128)
    h2 = jax.lax.broadcasted_iota(jnp.int32, (out_ref.shape[1], out_ref.shape[2]), 0)
    out = jnp.where(h2[None, :, :] == 0, active[:, None, :], seg_b[None, :, :])
    out_ref[...] = out.astype(out_ref.dtype)


def _pack_block_diag(w, copies):
    """Block-diagonal packing: `copies` independent copies of `w` on the diagonal."""
    return jnp.kron(jnp.eye(copies, dtype=w.dtype), w)


# ----------------------------------------------------------------------------
# Full forward, mirroring inference.forward()
# ----------------------------------------------------------------------------
def inference_forward(params, batched_stacked_sequences):
    B, Cl, C, T, H, W = batched_stacked_sequences.shape
    hp, wp = H // PATCH, W // PATCH
    sp = hp * wp
    # The reference hard-codes a 10-way temporal grouping and 10*FEAT seg
    # channels; the lane-dense packing additionally relies on sp * FEAT == 128.
    assert T == 10 and sp == SPATIAL_PER_FRAME, (T, sp)
    n_groups = B * Cl * T
    patch_dim = C * PATCH * PATCH

    # encode_data patchify (tubelet = 1): pure layout glue done once in XLA;
    # all matmuls + the 11x predictor loop + pad + 1x1 conv run in one kernel.
    x = batched_stacked_sequences.reshape(B * Cl, C, T, hp, PATCH, wp, PATCH)
    x = x.transpose(0, 2, 3, 5, 1, 4, 6)              # (N, T, hp, wp, C, P, P)
    patches = x.reshape(n_groups, sp * patch_dim)     # 4 patches packed per row

    # Lane-dense parameter packing (block-diagonal weights, tiled biases).
    enc_w4 = _pack_block_diag(params["enc_w"], sp)                # (4*patch_dim, 128)
    enc_b4 = jnp.tile(params["enc_b"], sp)[None, :]               # (1, 128)
    pred_w4 = _pack_block_diag(params["pred_w"], sp)              # (128, 128)
    pred_b4 = jnp.tile(params["pred_b"], sp)[None, :]             # (1, 128)
    # Only the first sp*FEAT input channels of the seg conv can be nonzero
    # after zero-padding; pad the 8 output channels to a 128-lane-dense output.
    seg_w_p = jnp.pad(params["seg_w"][: sp * FEAT, :],
                      ((0, 0), (0, LANES - NUM_CLASSES)))          # (128, 128)
    seg_b_p = jnp.pad(params["seg_b"], (0, LANES - NUM_CLASSES))[None, :]

    vmem = pl.BlockSpec(memory_space=pltpu.MemorySpace.VMEM)
    out3 = pl.pallas_call(
        _fused_inference_kernel,
        out_shape=jax.ShapeDtypeStruct((n_groups, 10, LANES), jnp.float32),
        in_specs=[vmem] * 7,
        out_specs=vmem,
    )(patches, enc_w4, enc_b4, pred_w4, pred_b4, seg_w_p, seg_b_p)

    # (B*Cl*T, 10, 128) -> real classes -> single final transpose to NCHW.
    mask = out3[:, :, :NUM_CLASSES].reshape(B * Cl, T, 10, NUM_CLASSES)
    return mask.transpose(0, 3, 1, 2)                 # (B*Cl, 8, 10, 10)


# ----------------------------------------------------------------------------
# Pure-JAX reference (unfused, literal translation of the PyTorch dataflow)
# ----------------------------------------------------------------------------
def _reference_forward(params, x):
    B, Cl, C, T, H, W = x.shape
    hp, wp = H // PATCH, W // PATCH
    hi = jax.lax.Precision.HIGHEST
    xr = x.reshape(B * Cl, C, T, hp, PATCH, wp, PATCH).transpose(0, 2, 3, 5, 1, 4, 6)
    patches = xr.reshape(B * Cl, T * hp * wp, C * PATCH * PATCH)
    enc = jnp.einsum("npk,kf->npf", patches, params["enc_w"], precision=hi) + params["enc_b"]
    enc = enc.reshape(B, Cl, T * hp * wp, FEAT)
    for _ in range(NUM_PREDICT):
        enc = jnp.einsum("bcpf,fg->bcpg", enc, params["pred_w"], precision=hi) + params["pred_b"]
    P = T * hp * wp
    padded = jnp.pad(enc.reshape(B * Cl, 10, P // 10, FEAT),
                     ((0, 0), (0, 0), (0, PADDED_SPATIAL - P // 10), (0, 0)))
    reshaped = padded.reshape(B * Cl, 10, 10, 10 * FEAT)          # NHWC
    out = jnp.einsum("nhwc,ck->nhwk", reshaped, params["seg_w"], precision=hi) + params["seg_b"]
    return out.transpose(0, 3, 1, 2)                              # NCHW


if __name__ == "__main__":
    key = jax.random.PRNGKey(0)
    k_params, k_data = jax.random.split(key)

    # Shapes consistent with the forward(): batch=2, clips=2, channels=3,
    # frames=10 (-> 10 temporal groups), H=W=16 (-> 4 spatial patches/frame).
    batch, clips, channels, frames, height, width = 2, 2, 3, 10, 16, 16
    x = jax.random.normal(
        k_data, (batch, clips, channels, frames, height, width), jnp.float32
    )
    params = make_params(k_params, channels)

    fwd = jax.jit(inference_forward)
    out = jax.block_until_ready(fwd(params, x))

    expected_shape = (batch * clips, NUM_CLASSES, 10, 10)
    assert out.shape == expected_shape, (out.shape, expected_shape)

    # Numerical check against the literal (unfused) dataflow.
    ref = _reference_forward(params, x)
    rel = jnp.linalg.norm(out - ref) / (jnp.linalg.norm(ref) + 1e-9)
    assert float(rel) < 0.1, float(rel)

    print("KERNEL_OK")
</pallas_src>

<mosaic_0001>
module attributes {stable_mosaic.version = 11 : i64} {
  func.func @_fused_inference_kernel(%arg0: memref<40x768xf32, #tpu.memory_space<vmem>>, %arg1: memref<768x128xf32, #tpu.memory_space<vmem>>, %arg2: memref<1x128xf32, #tpu.memory_space<vmem>>, %arg3: memref<128x128xf32, #tpu.memory_space<vmem>>, %arg4: memref<1x128xf32, #tpu.memory_space<vmem>>, %arg5: memref<128x128xf32, #tpu.memory_space<vmem>>, %arg6: memref<1x128xf32, #tpu.memory_space<vmem>>, %arg7: memref<40x10x128xf32, #tpu.memory_space<vmem>>) attributes {dimension_semantics = [], scalar_prefetch = 0 : i64, scratch_operands = 0 : i64, tpu.core_type = #tpu.core_type<tc>} {
    %c0 = arith.constant 0 : index
    %c0_0 = arith.constant 0 : index
    %0 = vector.load %arg0[%c0, %c0_0] : memref<40x768xf32, #tpu.memory_space<vmem>>, vector<40x768xf32>
    %c0_1 = arith.constant 0 : index
    %c0_2 = arith.constant 0 : index
    %1 = vector.load %arg1[%c0_1, %c0_2] : memref<768x128xf32, #tpu.memory_space<vmem>>, vector<768x128xf32>
    %cst = arith.constant dense<0.000000e+00> : vector<40x128xf32>
    %2 = tpu.matmul %0, %1, %cst {dimension_numbers = #tpu.dot_dimension_numbers<[1], [0], [0], [1], [0, 0, 1, 1], [], []>} : vector<40x768xf32>, vector<768x128xf32>, vector<40x128xf32> -> vector<40x128xf32>
    %c0_3 = arith.constant 0 : index
    %c0_4 = arith.constant 0 : index
    %3 = vector.load %arg2[%c0_3, %c0_4] : memref<1x128xf32, #tpu.memory_space<vmem>>, vector<1x128xf32>
    %4 = vector.broadcast %3 : vector<1x128xf32> to vector<40x128xf32>
    %5 = arith.addf %2, %4 : vector<40x128xf32>
    %c0_5 = arith.constant 0 : index
    %c0_6 = arith.constant 0 : index
    %6 = vector.load %arg3[%c0_5, %c0_6] : memref<128x128xf32, #tpu.memory_space<vmem>>, vector<128x128xf32>
    %c0_7 = arith.constant 0 : index
    %c0_8 = arith.constant 0 : index
    %7 = vector.load %arg4[%c0_7, %c0_8] : memref<1x128xf32, #tpu.memory_space<vmem>>, vector<1x128xf32>
    %8 = vector.shape_cast %7 : vector<1x128xf32> to vector<1x128xf32>
    %9 = vector.broadcast %8 : vector<1x128xf32> to vector<40x128xf32>
    %c0_i32 = arith.constant 0 : i32
    %cst_9 = arith.constant dense<0.000000e+00> : vector<40x128xf32>
    %10 = tpu.matmul %5, %6, %cst_9 {dimension_numbers = #tpu.dot_dimension_numbers<[1], [0], [0], [1], [0, 0, 1, 1], [], []>} : vector<40x128xf32>, vector<128x128xf32>, vector<40x128xf32> -> vector<40x128xf32>
    %11 = arith.addf %10, %9 : vector<40x128xf32>
    %c1_i32 = arith.constant 1 : i32
    %cst_10 = arith.constant dense<0.000000e+00> : vector<40x128xf32>
    %12 = tpu.matmul %11, %6, %cst_10 {dimension_numbers = #tpu.dot_dimension_numbers<[1], [0], [0], [1], [0, 0, 1, 1], [], []>} : vector<40x128xf32>, vector<128x128xf32>, vector<40x128xf32> -> vector<40x128xf32>
    %13 = arith.addf %12, %9 : vector<40x128xf32>
    %c2_i32 = arith.constant 2 : i32
    %cst_11 = arith.constant dense<0.000000e+00> : vector<40x128xf32>
    %14 = tpu.matmul %13, %6, %cst_11 {dimension_numbers = #tpu.dot_dimension_numbers<[1], [0], [0], [1], [0, 0, 1, 1], [], []>} : vector<40x128xf32>, vector<128x128xf32>, vector<40x128xf32> -> vector<40x128xf32>
    %15 = arith.addf %14, %9 : vector<40x128xf32>
    %c3_i32 = arith.constant 3 : i32
    %cst_12 = arith.constant dense<0.000000e+00> : vector<40x128xf32>
    %16 = tpu.matmul %15, %6, %cst_12 {dimension_numbers = #tpu.dot_dimension_numbers<[1], [0], [0], [1], [0, 0, 1, 1], [], []>} : vector<40x128xf32>, vector<128x128xf32>, vector<40x128xf32> -> vector<40x128xf32>
    %17 = arith.addf %16, %9 : vector<40x128xf32>
    %c4_i32 = arith.constant 4 : i32
    %cst_13 = arith.constant dense<0.000000e+00> : vector<40x128xf32>
    %18 = tpu.matmul %17, %6, %cst_13 {dimension_numbers = #tpu.dot_dimension_numbers<[1], [0], [0], [1], [0, 0, 1, 1], [], []>} : vector<40x128xf32>, vector<128x128xf32>, vector<40x128xf32> -> vector<40x128xf32>
    %19 = arith.addf %18, %9 : vector<40x128xf32>
    %c5_i32 = arith.constant 5 : i32
    %cst_14 = arith.constant dense<0.000000e+00> : vector<40x128xf32>
    %20 = tpu.matmul %19, %6, %cst_14 {dimension_numbers = #tpu.dot_dimension_numbers<[1], [0], [0], [1], [0, 0, 1, 1], [], []>} : vector<40x128xf32>, vector<128x128xf32>, vector<40x128xf32> -> vector<40x128xf32>
    %21 = arith.addf %20, %9 : vector<40x128xf32>
    %c6_i32 = arith.constant 6 : i32
    %cst_15 = arith.constant dense<0.000000e+00> : vector<40x128xf32>
    %22 = tpu.matmul %21, %6, %cst_15 {dimension_numbers = #tpu.dot_dimension_numbers<[1], [0], [0], [1], [0, 0, 1, 1], [], []>} : vector<40x128xf32>, vector<128x128xf32>, vector<40x128xf32> -> vector<40x128xf32>
    %23 = arith.addf %22, %9 : vector<40x128xf32>
    %c7_i32 = arith.constant 7 : i32
    %cst_16 = arith.constant dense<0.000000e+00> : vector<40x128xf32>
    %24 = tpu.matmul %23, %6, %cst_16 {dimension_numbers = #tpu.dot_dimension_numbers<[1], [0], [0], [1], [0, 0, 1, 1], [], []>} : vector<40x128xf32>, vector<128x128xf32>, vector<40x128xf32> -> vector<40x128xf32>
    %25 = arith.addf %24, %9 : vector<40x128xf32>
    %c8_i32 = arith.constant 8 : i32
    %cst_17 = arith.constant dense<0.000000e+00> : vector<40x128xf32>
    %26 = tpu.matmul %25, %6, %cst_17 {dimension_numbers = #tpu.dot_dimension_numbers<[1], [0], [0], [1], [0, 0, 1, 1], [], []>} : vector<40x128xf32>, vector<128x128xf32>, vector<40x128xf32> -> vector<40x128xf32>
    %27 = arith.addf %26, %9 : vector<40x128xf32>
    %c9_i32 = arith.constant 9 : i32
    %cst_18 = arith.constant dense<0.000000e+00> : vector<40x128xf32>
    %28 = tpu.matmul %27, %6, %cst_18 {dimension_numbers = #tpu.dot_dimension_numbers<[1], [0], [0], [1], [0, 0, 1, 1], [], []>} : vector<40x128xf32>, vector<128x128xf32>, vector<40x128xf32> -> vector<40x128xf32>
    %29 = arith.addf %28, %9 : vector<40x128xf32>
    %c10_i32 = arith.constant 10 : i32
    %cst_19 = arith.constant dense<0.000000e+00> : vector<40x128xf32>
    %30 = tpu.matmul %29, %6, %cst_19 {dimension_numbers = #tpu.dot_dimension_numbers<[1], [0], [0], [1], [0, 0, 1, 1], [], []>} : vector<40x128xf32>, vector<128x128xf32>, vector<40x128xf32> -> vector<40x128xf32>
    %31 = arith.addf %30, %9 : vector<40x128xf32>
    %c0_20 = arith.constant 0 : index
    %c0_21 = arith.constant 0 : index
    %32 = vector.load %arg6[%c0_20, %c0_21] : memref<1x128xf32, #tpu.memory_space<vmem>>, vector<1x128xf32>
    %c0_22 = arith.constant 0 : index
    %c0_23 = arith.constant 0 : index
    %33 = vector.load %arg5[%c0_22, %c0_23] : memref<128x128xf32, #tpu.memory_space<vmem>>, vector<128x128xf32>
    %cst_24 = arith.constant dense<0.000000e+00> : vector<40x128xf32>
    %34 = tpu.matmul %31, %33, %cst_24 {dimension_numbers = #tpu.dot_dimension_numbers<[1], [0], [0], [1], [0, 0, 1, 1], [], []>} : vector<40x128xf32>, vector<128x128xf32>, vector<40x128xf32> -> vector<40x128xf32>
    %35 = vector.broadcast %32 : vector<1x128xf32> to vector<40x128xf32>
    %36 = arith.addf %34, %35 : vector<40x128xf32>
    %37 = tpu.iota {dimensions = array<i32: 0>} : vector<10x128xi32>
    %38 = vector.shape_cast %37 : vector<10x128xi32> to vector<1x10x128xi32>
    %c0_i32_25 = arith.constant 0 : i32
    %39 = vector.broadcast %c0_i32_25 : i32 to vector<1x10x128xi32>
    %40 = arith.cmpi eq, %38, %39 : vector<1x10x128xi32>
    %41 = vector.shape_cast %36 : vector<40x128xf32> to vector<40x1x128xf32>
    %42 = vector.shape_cast %32 : vector<1x128xf32> to vector<1x1x128xf32>
    %43 = vector.shape_cast %40 : vector<1x10x128xi1> to vector<1x10x128xi1>
    %44 = vector.broadcast %43 : vector<1x10x128xi1> to vector<40x10x128xi1>
    %45 = vector.shape_cast %41 : vector<40x1x128xf32> to vector<40x1x128xf32>
    %46 = vector.broadcast %45 : vector<40x1x128xf32> to vector<40x10x128xf32>
    %47 = vector.shape_cast %42 : vector<1x1x128xf32> to vector<1x1x128xf32>
    %48 = vector.broadcast %47 : vector<1x1x128xf32> to vector<40x10x128xf32>
    %49 = arith.select %44, %46, %48 : vector<40x10x128xi1>, vector<40x10x128xf32>
    %c0_26 = arith.constant 0 : index
    %c0_27 = arith.constant 0 : index
    %c0_28 = arith.constant 0 : index
    %50 = vector.load %arg7[%c0_26, %c0_27, %c0_28] : memref<40x10x128xf32, #tpu.memory_space<vmem>>, vector<40x10x128xf32>
    tpu.vector_store %arg7[%c0_26, %c0_27, %c0_28], %49 {strides = array<i32>} : memref<40x10x128xf32, #tpu.memory_space<vmem>>, vector<40x10x128xf32>,
    return
  }
}

</mosaic_0001>

<bundles_post_ra>
// kernel: tile.13
= control target key start
LH: loop header
LB: loop body
LE: loop exit
PB: predicated region body
PF: predicated region fallthrough
CT: control target
= control target key end

     0   :  { %s22_s0 = inlined_call_operand.vmem [shape: f32[32], index: 0, kind: input, shape index: {}]   ;;  %s23_s1 = inlined_call_operand.vmem [shape: f32[4,32], index: 1, kind: output, shape index: {}]  }
   0x1   :  { %v4_v0 = vld [vmem:[%s22_s0] ss:$0 sm:$0xff] }
   0x2   :  { %5 = vst [vmem:[%s23_s1] sm:$0xf] %v4_v0 }

// kernel: tile.14
= control target key start
LH: loop header
LB: loop body
LE: loop exit
PB: predicated region body
PF: predicated region fallthrough
CT: control target
= control target key end

     0   :  { %vm8_vm0 = vcmask 261120   ;;  %s40_s8 = smov 32   ;;  %s41_s9 = smov 64   ;;  %vm14_vm1 = vcmask 1048320   ;;  %vm20_vm2 = vcmask 785920   ;;  %vm26_vm3 = vcmask 523520   ;;  %s58_s0 = inlined_call_operand.vmem [shape: f32[4,32], index: 0, kind: input, shape index: {}]   ;;  %s59_s1 = inlined_call_operand.vmem [shape: f32[1,128], index: 1, kind: output, shape index: {}]  }
   0x1   :  { %v5_v0 = vld [vmem:[%s58_s0] sm:$0xf]  ;;  %s39_s0 = smov 96  }
   0x2   :  { %6 = vst [vmem:[#allocation1] sm:$0xf] %v5_v0 }
   0x9   :  { %v11_v1 = vld [vmem:[#allocation1 + $0x3] sm:$0x1]   ;;  %v23_v2 = vld [vmem:[#allocation1 + $0x1] sm:$0x1]   ;;  %v7_v3 = vld [vmem:[#allocation1] sm:$0x1]  }
   0xa   :  { %12 = vrot.lane.b32.xlu0 %v11_v1, %s39_s0  ;;  %24 = vrot.lane.b32.xlu1 %v23_v2, %s40_s8  ;;  %v17_v4 = vld [vmem:[#allocation1 + $0x2] sm:$0x1]   ;;  %9 = vst.msk [vmem:[#allocation0] sm:$0x1] %vm8_vm0, %v7_v3  }
   0xe   :  { %18 = vrot.lane.b32.xlu0 %v17_v4, %s41_s9 }
  0x7c   :  { %v13_v5 = vpop.permute.xlu0 %12   ;;  %v25_v6 = vpop.permute.xlu1 %24  }
  0x7d   :  { %15 = vst.msk [vmem:[#allocation0] sm:$0x1] %vm14_vm1, %v13_v5  }
  0x80   :  { %v19_v7 = vpop.permute.xlu0 %18  }
  0x81   :  { %21 = vst.msk [vmem:[#allocation0] sm:$0x1] %vm20_vm2, %v19_v7  }
  0x82   :  { %27 = vst.msk [vmem:[#allocation0] sm:$0x1] %vm26_vm3, %v25_v6  }
  0x89   :  { %v32_v8 = vld [vmem:[#allocation0] sm:$0x1] }
  0x8a   :  { %35 = vst [vmem:[%s59_s1] sm:$0x1] %v32_v8 }

// kernel: inference_forward.1
= control target key start
LH: loop header
LB: loop body
LE: loop exit
PB: predicated region body
PF: predicated region fallthrough
CT: control target
= control target key end

     0   :  { %vm3191_vm0 = vmmov 0   ;;  %s4861_s1 = inlined_call_operand.vmem [shape: f32[768,128], index: 1, kind: input, shape index: {}]   ;;  %s4862_s0 = inlined_call_operand.vmem [shape: f32[40,768], index: 0, kind: input, shape index: {}]   ;;  %s4863_s3 = inlined_call_operand.vmem [shape: f32[128,128], index: 3, kind: input, shape index: {}]   ;;  %s4864_s2 = inlined_call_operand.vmem [shape: f32[1,128], index: 2, kind: input, shape index: {}]   ;;  %s4865_s4 = inlined_call_operand.vmem [shape: f32[1,128], index: 4, kind: input, shape index: {}]   ;;  %s4866_s5 = inlined_call_operand.vmem [shape: f32[128,128], index: 5, kind: input, shape index: {}]   ;;  %s4867_s6 = inlined_call_operand.vmem [shape: f32[1,128], index: 6, kind: input, shape index: {}]   ;;  %s4868_s7 = inlined_call_operand.vmem [shape: f32[40,10,128], index: 7, kind: output, shape index: {}]  }
   0x1   :  { %v87_v0 = vld [vmem:[%s4861_s1 + $0xf8] sm:$0xff]  ;;  %v86_v2 = vld [vmem:[%s4861_s1 + $0xf0] sm:$0xff]  ;;  %v85_v6 = vld [vmem:[%s4861_s1 + $0xe8] sm:$0xff] }
   0x2   :  { %v71_v1 = vld [vmem:[%s4861_s1 + $0x78] sm:$0xff]  ;;  %2181 = vmatprep.subr.mxu0 %v87_v0  ;;  %v70_v4 = vld [vmem:[%s4861_s1 + $0x70] sm:$0xff]  ;;  %v69_v8 = vld [vmem:[%s4861_s1 + $0x68] sm:$0xff] }
   0x3   :  { %v119_v3 = vld [vmem:[%s4861_s1 + $0x1f8] sm:$0xff]  ;;  %2182 = vmatpush3.msra.mxu0 %v71_v1  ;;  %v118_v7 = vld [vmem:[%s4861_s1 + $0x1f0] sm:$0xff]  ;;  %v117_v10 = vld [vmem:[%s4861_s1 + $0x1e8] sm:$0xff] }
   0x4   :  { %v103_v5 = vld [vmem:[%s4861_s1 + $0x178] sm:$0xff]  ;;  %2228 = vmatprep.subr.mxu1 %v119_v3  ;;  %2183 = vmatprep.subr.mxu0 %v86_v2  ;;  %v102_v9 = vld [vmem:[%s4861_s1 + $0x170] sm:$0xff]  ;;  %v84_v11 = vld [vmem:[%s4861_s1 + $0xe0] sm:$0xff] }
   0x5   :  { %2229 = vmatpush3.msra.mxu1 %v103_v5  ;;  %2184 = vmatpush3.msra.mxu0 %v70_v4  ;;  %v101_v12 = vld [vmem:[%s4861_s1 + $0x168] sm:$0xff]  ;;  %v68_v13 = vld [vmem:[%s4861_s1 + $0x60] sm:$0xff]  ;;  %v83_v15 = vld [vmem:[%s4861_s1 + $0xd8] sm:$0xff] }
   0x6   :  { %2230 = vmatprep.subr.mxu1 %v118_v7  ;;  %2185 = vmatprep.subr.mxu0 %v85_v6  ;;  %v116_v14 = vld [vmem:[%s4861_s1 + $0x1e0] sm:$0xff]  ;;  %v67_v17 = vld [vmem:[%s4861_s1 + $0x58] sm:$0xff]  ;;  %v82_v19 = vld [vmem:[%s4861_s1 + $0xd0] sm:$0xff] }
   0x7   :  { %2231 = vmatpush3.msra.mxu1 %v102_v9  ;;  %2186 = vmatpush3.msra.mxu0 %v69_v8  ;;  %v100_v16 = vld [vmem:[%s4861_s1 + $0x160] sm:$0xff]  ;;  %v115_v18 = vld [vmem:[%s4861_s1 + $0x1d8] sm:$0xff]  ;;  %v66_v21 = vld [vmem:[%s4861_s1 + $0x50] sm:$0xff] }
   0x8   :  { %2232 = vmatprep.subr.mxu1 %v117_v10  ;;  %2187 = vmatprep.subr.mxu0 %v84_v11  ;;  %v99_v20 = vld [vmem:[%s4861_s1 + $0x158] sm:$0xff]  ;;  %v114_v22 = vld [vmem:[%s4861_s1 + $0x1d0] sm:$0xff]  ;;  %v81_v23 = vld [vmem:[%s4861_s1 + $0xc8] sm:$0xff] }
   0x9   :  { %2233 = vmatpush3.msra.mxu1 %v101_v12  ;;  %2188 = vmatpush3.msra.mxu0 %v68_v13  ;;  %v98_v24 = vld [vmem:[%s4861_s1 + $0x150] sm:$0xff]  ;;  %v65_v25 = vld [vmem:[%s4861_s1 + $0x48] sm:$0xff]  ;;  %v80_v27 = vld [vmem:[%s4861_s1 + $0xc0] sm:$0xff] }
   0xa   :  { %2234 = vmatprep.subr.mxu1 %v116_v14  ;;  %2189 = vmatprep.subr.mxu0 %v83_v15  ;;  %v113_v26 = vld [vmem:[%s4861_s1 + $0x1c8] sm:$0xff]  ;;  %v64_v29 = vld [vmem:[%s4861_s1 + $0x40] sm:$0xff]  ;;  %v79_v31 = vld [vmem:[%s4861_s1 + $0xb8] sm:$0xff] }
   0xb   :  { %2235 = vmatpush3.msra.mxu1 %v100_v16  ;;  %2190 = vmatpush3.msra.mxu0 %v67_v17  ;;  %v97_v28 = vld [vmem:[%s4861_s1 + $0x148] sm:$0xff]  ;;  %v112_v30 = vld [vmem:[%s4861_s1 + $0x1c0] sm:$0xff]  ;;  %v63_v33 = vld [vmem:[%s4861_s1 + $0x38] sm:$0xff] }
   0xc   :  { %2236 = vmatprep.subr.mxu1 %v115_v18  ;;  %2191 = vmatprep.subr.mxu0 %v82_v19  ;;  %v96_v32 = vld [vmem:[%s4861_s1 + $0x140] sm:$0xff]  ;;  %v111_v34 = vld [vmem:[%s4861_s1 + $0x1b8] sm:$0xff]  ;;  %v78_v35 = vld [vmem:[%s4861_s1 + $0xb0] sm:$0xff] }
   0xd   :  { %2237 = vmatpush3.msra.mxu1 %v99_v20  ;;  %2192 = vmatpush3.msra.mxu0 %v66_v21  ;;  %v95_v36 = vld [vmem:[%s4861_s1 + $0x138] sm:$0xff]  ;;  %v62_v37 = vld [vmem:[%s4861_s1 + $0x30] sm:$0xff]  ;;  %v77_v39 = vld [vmem:[%s4861_s1 + $0xa8] sm:$0xff] }
   0xe   :  { %2238 = vmatprep.subr.mxu1 %v114_v22  ;;  %2193 = vmatprep.subr.mxu0 %v81_v23  ;;  %v110_v38 = vld [vmem:[%s4861_s1 + $0x1b0] sm:$0xff]  ;;  %v61_v41 = vld [vmem:[%s4861_s1 + $0x28] sm:$0xff]  ;;  %v76_v43 = vld [vmem:[%s4861_s1 + $0xa0] sm:$0xff] }
   0xf   :  { %2239 = vmatpush3.msra.mxu1 %v98_v24  ;;  %2194 = vmatpush3.msra.mxu0 %v65_v25  ;;  %v94_v40 = vld [vmem:[%s4861_s1 + $0x130] sm:$0xff]  ;;  %v109_v42 = vld [vmem:[%s4861_s1 + $0x1a8] sm:$0xff]  ;;  %v60_v45 = vld [vmem:[%s4861_s1 + $0x20] sm:$0xff] }
  0x10   :  { %2240 = vmatprep.subr.mxu1 %v113_v26  ;;  %2195 = vmatprep.subr.mxu0 %v80_v27  ;;  %v93_v44 = vld [vmem:[%s4861_s1 + $0x128] sm:$0xff]  ;;  %v108_v46 = vld [vmem:[%s4861_s1 + $0x1a0] sm:$0xff]  ;;  %v75_v47 = vld [vmem:[%s4861_s1 + $0x98] sm:$0xff] }
  0x11   :  { %2241 = vmatpush3.msra.mxu1 %v97_v28  ;;  %2196 = vmatpush3.msra.mxu0 %v64_v29  ;;  %v92_v48 = vld [vmem:[%s4861_s1 + $0x120] sm:$0xff]  ;;  %v59_v49 = vld [vmem:[%s4861_s1 + $0x18] sm:$0xff]  ;;  %v74_v51 = vld [vmem:[%s4861_s1 + $0x90] sm:$0xff] }
  0x12   :  { %2242 = vmatprep.subr.mxu1 %v112_v30  ;;  %2197 = vmatprep.subr.mxu0 %v79_v31  ;;  %v107_v50 = vld [vmem:[%s4861_s1 + $0x198] sm:$0xff]  ;;  %v58_v53 = vld [vmem:[%s4861_s1 + $0x10] sm:$0xff]  ;;  %v73_v55 = vld [vmem:[%s4861_s1 + $0x88] sm:$0xff] }
  0x13   :  { %2243 = vmatpush3.msra.mxu1 %v96_v32  ;;  %2198 = vmatpush3.msra.mxu0 %v63_v33  ;;  %v91_v52 = vld [vmem:[%s4861_s1 + $0x118] sm:$0xff]  ;;  %v106_v54 = vld [vmem:[%s4861_s1 + $0x190] sm:$0xff]  ;;  %v57_v57 = vld [vmem:[%s4861_s1 + $0x8] sm:$0xff] }
  0x14   :  { %2244 = vmatprep.subr.mxu1 %v111_v34  ;;  %2199 = vmatprep.subr.mxu0 %v78_v35  ;;  %v90_v56 = vld [vmem:[%s4861_s1 + $0x110] sm:$0xff]  ;;  %v105_v58 = vld [vmem:[%s4861_s1 + $0x188] sm:$0xff]  ;;  %v72_v59 = vld [vmem:[%s4861_s1 + $0x80] sm:$0xff] }
  0x15   :  { %2245 = vmatpush3.msra.mxu1 %v95_v36  ;;  %2200 = vmatpush3.msra.mxu0 %v62_v37  ;;  %v27_v60 = vld [vmem:[%s4862_s0 + $0x8] sm:$0xff]  ;;  %v56_v61 = vld [vmem:[%s4861_s1] sm:$0xff]  ;;  %v151_v1 = vld [vmem:[%s4861_s1 + $0x2f8] sm:$0xff] }
  0x16   :  { %2246 = vmatprep.subr.mxu1 %v110_v38  ;;  %2201 = vmatprep.subr.mxu0 %v77_v39  ;;  %v89_v62 = vld [vmem:[%s4861_s1 + $0x108] sm:$0xff]  ;;  %v26_v63 = vld [vmem:[%s4862_s0] sm:$0xff]  ;;  %v29_v3 = vld [vmem:[%s4862_s0 + $0x18] sm:$0xff] }
  0x17   :  { %2247 = vmatpush3.msra.mxu1 %v94_v40  ;;  %2202 = vmatpush3.msra.mxu0 %v61_v41  ;;  %v104_v0 = vld [vmem:[%s4861_s1 + $0x180] sm:$0xff]  ;;  %v135_v4 = vld [vmem:[%s4861_s1 + $0x278] sm:$0xff]  ;;  %v28_v5 = vld [vmem:[%s4862_s0 + $0x10] sm:$0xff] }
  0x18   :  { %2248 = vmatprep.subr.mxu1 %v109_v42  ;;  %2203 = vmatprep.subr.mxu0 %v76_v43  ;;  %v88_v2 = vld [vmem:[%s4861_s1 + $0x100] sm:$0xff]  ;;  %v150_v6 = vld [vmem:[%s4861_s1 + $0x2f0] sm:$0xff]  ;;  %v33_v8 = vld [vmem:[%s4862_s0 + $0x38] sm:$0xff] }
  0x19   :  { %2249 = vmatpush3.msra.mxu1 %v93_v44  ;;  %2204 = vmatpush3.msra.mxu0 %v60_v45  ;;  %v134_v7 = vld [vmem:[%s4861_s1 + $0x270] sm:$0xff]  ;;  %v149_v9 = vld [vmem:[%s4861_s1 + $0x2e8] sm:$0xff]  ;;  %v148_v13 = vld [vmem:[%s4861_s1 + $0x2e0] sm:$0xff] }
  0x1a   :  { %2250 = vmatprep.subr.mxu1 %v108_v46  ;;  %2205 = vmatprep.subr.mxu0 %v75_v47  ;;  %v32_v10 = vld [vmem:[%s4862_s0 + $0x30] sm:$0xff]  ;;  %v133_v11 = vld [vmem:[%s4861_s1 + $0x268] sm:$0xff]  ;;  %v34_v14 = vld [vmem:[%s4862_s0 + $0x40] sm:$0xff] }
  0x1b   :  { %2251 = vmatpush3.msra.mxu1 %v92_v48  ;;  %2206 = vmatpush3.msra.mxu0 %v59_v49  ;;  %v35_v12 = vld [vmem:[%s4862_s0 + $0x48] sm:$0xff]  ;;  %v132_v15 = vld [vmem:[%s4861_s1 + $0x260] sm:$0xff]  ;;  %v147_v17 = vld [vmem:[%s4861_s1 + $0x2d8] sm:$0xff] }
  0x1c   :  { %2252 = vmatprep.subr.mxu1 %v107_v50  ;;  %2207 = vmatprep.subr.mxu0 %v74_v51  ;;  %v39_v16 = vld [vmem:[%s4862_s0 + $0x68] sm:$0xff]  ;;  %v38_v18 = vld [vmem:[%s4862_s0 + $0x60] sm:$0xff]  ;;  %v131_v19 = vld [vmem:[%s4861_s1 + $0x258] sm:$0xff] }
  0x1d   :  { %2253 = vmatpush3.msra.mxu1 %v91_v52  ;;  %2208 = vmatpush3.msra.mxu0 %v58_v53  ;;  %v41_v20 = vld [vmem:[%s4862_s0 + $0x78] sm:$0xff]  ;;  %v146_v21 = vld [vmem:[%s4861_s1 + $0x2d0] sm:$0xff]  ;;  %v145_v25 = vld [vmem:[%s4861_s1 + $0x2c8] sm:$0xff] }
  0x1e   :  { %2254 = vmatprep.subr.mxu1 %v106_v54  ;;  %2209 = vmatprep.subr.mxu0 %v73_v55  ;;  %v40_v22 = vld [vmem:[%s4862_s0 + $0x70] sm:$0xff]  ;;  %v45_v24 = vld [vmem:[%s4862_s0 + $0x98] sm:$0xff]  ;;  %v129_v27 = vld [vmem:[%s4861_s1 + $0x248] sm:$0xff] }
  0x1f   :  { %2255 = vmatpush3.msra.mxu1 %v90_v56  ;;  %2210 = vmatpush3.msra.mxu0 %v57_v57  ;;  %v130_v23 = vld [vmem:[%s4861_s1 + $0x250] sm:$0xff]  ;;  %v47_v28 = vld [vmem:[%s4862_s0 + $0xa8] sm:$0xff]  ;;  %v144_v29 = vld [vmem:[%s4861_s1 + $0x2c0] sm:$0xff] }
  0x20   :  { %2256 = vmatprep.subr.mxu1 %v105_v58  ;;  %2211 = vmatprep.subr.mxu0 %v72_v59  ;;  %v44_v26 = vld [vmem:[%s4862_s0 + $0x90] sm:$0xff]  ;;  %v46_v30 = vld [vmem:[%s4862_s0 + $0xa0] sm:$0xff]  ;;  %v51_v32 = vld [vmem:[%s4862_s0 + $0xc8] sm:$0xff] }
  0x21   :  { %223 = vmatprep.mubr.f32.mxu0 %v27_v60  ;;  %2212 = vmatpush3.msra.mxu0 %v56_v61  ;;  %v128_v31 = vld [vmem:[%s4861_s1 + $0x240] sm:$0xff]  ;;  %v143_v33 = vld [vmem:[%s4861_s1 + $0x2b8] sm:$0xff]  ;;  %v142_v37 = vld [vmem:[%s4861_s1 + $0x2b0] sm:$0xff] }
  0x22   :  { %2257 = vmatpush3.msra.mxu1 %v89_v62  ;;  %224 = vmatmul.mubr.f32.vlgmr.msra.gmra.mxu0 %v26_v63  ;;  %v50_v34 = vld [vmem:[%s4862_s0 + $0xc0] sm:$0xff]  ;;  %v127_v35 = vld [vmem:[%s4861_s1 + $0x238] sm:$0xff]  ;;  %v52_v38 = vld [vmem:[%s4862_s0 + $0xd0] sm:$0xff]  ;;  %v3190_v62 = vmov 0.0  }
  0x23   :  { %2258 = vmatprep.subr.mxu1 %v104_v0  ;;  %2275 = vmatprep.subr.mxu0 %v151_v1  ;;  %v53_v36 = vld [vmem:[%s4862_s0 + $0xd8] sm:$0xff]  ;;  %v126_v39 = vld [vmem:[%s4861_s1 + $0x230] sm:$0xff]  ;;  %v31_v40 = vld [vmem:[%s4862_s0 + $0x28] sm:$0xff] }
  0x24   :  { %2259 = vmatpush3.msra.mxu1 %v88_v2  ;;  %313 = vmatprep.mubr.f32.mxu1 %v29_v3  ;;  %v141_v41 = vld [vmem:[%s4861_s1 + $0x2a8] sm:$0xff]  ;;  %v140_v43 = vld [vmem:[%s4861_s1 + $0x2a0] sm:$0xff]  ;;  %v139_v45 = vld [vmem:[%s4861_s1 + $0x298] sm:$0xff] }
  0x25   :  { %2276 = vmatpush3.msra.mxu0 %v135_v4  ;;  %314 = vmatmul.mubr.f32.vlgmr.msra.gmra.mxu1 %v28_v5  ;;  %v125_v42 = vld [vmem:[%s4861_s1 + $0x228] sm:$0xff]  ;;  %v124_v44 = vld [vmem:[%s4861_s1 + $0x220] sm:$0xff]  ;;  %v123_v46 = vld [vmem:[%s4861_s1 + $0x218] sm:$0xff] }
  0x26   :  { %2277 = vmatprep.subr.mxu0 %v150_v6  ;;  %228 = vmatprep.mubr.f32.mxu0 %v33_v8  ;;  %v138_v47 = vld [vmem:[%s4861_s1 + $0x290] sm:$0xff]  ;;  %v137_v49 = vld [vmem:[%s4861_s1 + $0x288] sm:$0xff]  ;;  %v136_v51 = vld [vmem:[%s4861_s1 + $0x280] sm:$0xff] }
  0x27   :  { %2278 = vmatpush3.msra.mxu0 %v134_v7  ;;  %318 = vmatprep.mubr.f32.mxu1 %v35_v12  ;;  %v122_v48 = vld [vmem:[%s4861_s1 + $0x210] sm:$0xff]  ;;  %v121_v50 = vld [vmem:[%s4861_s1 + $0x208] sm:$0xff]  ;;  %v120_v52 = vld [vmem:[%s4861_s1 + $0x200] sm:$0xff] }
  0x28   :  { %2279 = vmatprep.subr.mxu0 %v149_v9  ;;  %229 = vmatmul.mubr.f32.gmra.mxu0 %v32_v10  ;;  %v30_v53 = vld [vmem:[%s4862_s0 + $0x20] sm:$0xff]  ;;  %v37_v54 = vld [vmem:[%s4862_s0 + $0x58] sm:$0xff]  ;;  %v36_v55 = vld [vmem:[%s4862_s0 + $0x50] sm:$0xff] }
  0x29   :  { %2280 = vmatpush3.msra.mxu0 %v133_v11  ;;  %319 = vmatmul.mubr.f32.gmra.mxu1 %v34_v14  ;;  %v43_v56 = vld [vmem:[%s4862_s0 + $0x88] sm:$0xff]  ;;  %v42_v57 = vld [vmem:[%s4862_s0 + $0x80] sm:$0xff]  ;;  %v49_v58 = vld [vmem:[%s4862_s0 + $0xb8] sm:$0xff] }
  0x2a   :  { %2281 = vmatprep.subr.mxu0 %v148_v13  ;;  %233 = vmatprep.mubr.f32.mxu0 %v39_v16  ;;  %v48_v59 = vld [vmem:[%s4862_s0 + $0xb0] sm:$0xff]  ;;  %v55_v60 = vld [vmem:[%s4862_s0 + $0xe8] sm:$0xff]  ;;  %v54_v61 = vld [vmem:[%s4862_s0 + $0xe0] sm:$0xff] }
  0x2b   :  { %2282 = vmatpush3.msra.mxu0 %v132_v15  ;;  %323 = vmatprep.mubr.f32.mxu1 %v41_v20  ;;  %v3615_v63 = vld [vmem:[%s4863_s3 + $0x78] sm:$0xff]  ;;  %v3620_v0 = vld [vmem:[%s4863_s3 + $0x70] sm:$0xff]  ;;  %v3629_v1 = vld [vmem:[%s4863_s3 + $0x68] sm:$0xff] }
  0x2c   :  { %2283 = vmatprep.subr.mxu0 %v147_v17  ;;  %234 = vmatmul.mubr.f32.gmra.mxu0 %v38_v18  ;;  %v3638_v2 = vld [vmem:[%s4863_s3 + $0x60] sm:$0xff]  ;;  %v3647_v3 = vld [vmem:[%s4863_s3 + $0x58] sm:$0xff]  ;;  %v3656_v4 = vld [vmem:[%s4863_s3 + $0x50] sm:$0xff] }
  0x2d   :  { %2284 = vmatpush3.msra.mxu0 %v131_v19  ;;  %324 = vmatmul.mubr.f32.gmra.mxu1 %v40_v22  ;;  %v3665_v5 = vld [vmem:[%s4863_s3 + $0x48] sm:$0xff]  ;;  %v3674_v6 = vld [vmem:[%s4863_s3 + $0x40] sm:$0xff]  ;;  %v3683_v7 = vld [vmem:[%s4863_s3 + $0x38] sm:$0xff] }
  0x2e   :  { %2285 = vmatprep.subr.mxu0 %v146_v21  ;;  %238 = vmatprep.mubr.f32.mxu0 %v45_v24  ;;  %v3692_v8 = vld [vmem:[%s4863_s3 + $0x30] sm:$0xff]  ;;  %v3701_v9 = vld [vmem:[%s4863_s3 + $0x28] sm:$0xff]  ;;  %v3710_v10 = vld [vmem:[%s4863_s3 + $0x20] sm:$0xff] }
  0x2f   :  { %2286 = vmatpush3.msra.mxu0 %v130_v23  ;;  %328 = vmatprep.mubr.f32.mxu1 %v47_v28  ;;  %v3723_v11 = vld [vmem:[%s4863_s3 + $0x18] sm:$0xff]  ;;  %v3732_v12 = vld [vmem:[%s4863_s3 + $0x10] sm:$0xff]  ;;  %v3741_v13 = vld [vmem:[%s4863_s3 + $0x8] sm:$0xff] }
  0x30   :  { %2287 = vmatprep.subr.mxu0 %v145_v25  ;;  %239 = vmatmul.mubr.f32.gmra.mxu0 %v44_v26  ;;  %v3750_v14 = vld [vmem:[%s4863_s3] sm:$0xff] }
  0x31   :  { %2288 = vmatpush3.msra.mxu0 %v129_v27  ;;  %329 = vmatmul.mubr.f32.gmra.mxu1 %v46_v30  ;;  %v2178_v30 = vld [vmem:[%s4864_s2] ss:$0 sm:$0xff] }
  0x32   :  { %2289 = vmatprep.subr.mxu0 %v144_v29  ;;  %243 = vmatprep.mubr.f32.mxu0 %v51_v32 }
  0x33   :  { %2290 = vmatpush3.msra.mxu0 %v128_v31  ;;  %333 = vmatprep.mubr.f32.mxu1 %v53_v36 }
  0x34   :  { %2291 = vmatprep.subr.mxu0 %v143_v33  ;;  %244 = vmatmul.mubr.f32.gmra.mxu0 %v50_v34 }
  0x35   :  { %2292 = vmatpush3.msra.mxu0 %v127_v35  ;;  %334 = vmatmul.mubr.f32.gmra.mxu1 %v52_v38 }
  0x36   :  { %2293 = vmatprep.subr.mxu0 %v142_v37  ;;  %403 = vmatprep.mubr.f32.mxu0 %v31_v40 }
  0x37   :  { %2294 = vmatpush3.msra.mxu0 %v126_v39  ;;  %2574 = vmatprep.subr.mxu1 %v3190_v62 }
  0x38   :  { %2295 = vmatprep.subr.mxu0 %v141_v41  ;;  %2575 = vmatpush3.msra.mxu1 %v3615_v63 }
  0x39   :  { %2296 = vmatpush3.msra.mxu0 %v125_v42  ;;  %2576 = vmatprep.subr.mxu1 %v3190_v62 }
  0x3a   :  { %2297 = vmatprep.subr.mxu0 %v140_v43  ;;  %2577 = vmatpush3.msra.mxu1 %v3620_v0 }
  0x3b   :  { %2298 = vmatpush3.msra.mxu0 %v124_v44  ;;  %2578 = vmatprep.subr.mxu1 %v3190_v62 }
  0x3c   :  { %2299 = vmatprep.subr.mxu0 %v139_v45  ;;  %2579 = vmatpush3.msra.mxu1 %v3629_v1 }
  0x3d   :  { %2300 = vmatpush3.msra.mxu0 %v123_v46  ;;  %2580 = vmatprep.subr.mxu1 %v3190_v62 }
  0x3e   :  { %2301 = vmatprep.subr.mxu0 %v138_v47  ;;  %2581 = vmatpush3.msra.mxu1 %v3638_v2 }
  0x3f   :  { %2302 = vmatpush3.msra.mxu0 %v122_v48  ;;  %2582 = vmatprep.subr.mxu1 %v3190_v62 }
  0x40   :  { %2303 = vmatprep.subr.mxu0 %v137_v49  ;;  %2583 = vmatpush3.msra.mxu1 %v3647_v3 }
  0x41   :  { %2304 = vmatpush3.msra.mxu0 %v121_v50  ;;  %2584 = vmatprep.subr.mxu1 %v3190_v62 }
  0x42   :  { %2305 = vmatprep.subr.mxu0 %v136_v51  ;;  %2585 = vmatpush3.msra.mxu1 %v3656_v4 }
  0x43   :  { %2306 = vmatpush3.msra.mxu0 %v120_v52  ;;  %2586 = vmatprep.subr.mxu1 %v3190_v62 }
  0x44   :  { %404 = vmatmul.mubr.f32.vlgmr.msra.gmra.mxu0 %v30_v53  ;;  %2621 = vmatprep.subr.mxu0 %v3190_v62 }
  0x45   :  { %408 = vmatprep.mubr.f32.mxu0 %v37_v54  ;;  %2622 = vmatpush3.msra.mxu0 %v3615_v63 }
  0x46   :  { %2623 = vmatprep.subr.mxu0 %v3190_v62  ;;  %2587 = vmatpush3.msra.mxu1 %v3665_v5 }
  0x47   :  { %2624 = vmatpush3.msra.mxu0 %v3620_v0  ;;  %2588 = vmatprep.subr.mxu1 %v3190_v62 }
  0x48   :  { %409 = vmatmul.mubr.f32.gmra.mxu0 %v36_v55  ;;  %2625 = vmatprep.subr.mxu0 %v3190_v62 }
  0x49   :  { %413 = vmatprep.mubr.f32.mxu0 %v43_v56  ;;  %2626 = vmatpush3.msra.mxu0 %v3629_v1 }
  0x4a   :  { %2627 = vmatprep.subr.mxu0 %v3190_v62  ;;  %2589 = vmatpush3.msra.mxu1 %v3674_v6 }
  0x4b   :  { %2628 = vmatpush3.msra.mxu0 %v3638_v2  ;;  %2590 = vmatprep.subr.mxu1 %v3190_v62 }
  0x4c   :  { %414 = vmatmul.mubr.f32.gmra.mxu0 %v42_v57  ;;  %2629 = vmatprep.subr.mxu0 %v3190_v62 }
  0x4d   :  { %418 = vmatprep.mubr.f32.mxu0 %v49_v58  ;;  %2630 = vmatpush3.msra.mxu0 %v3647_v3 }
  0x4e   :  { %2631 = vmatprep.subr.mxu0 %v3190_v62  ;;  %2591 = vmatpush3.msra.mxu1 %v3683_v7 }
  0x4f   :  { %2632 = vmatpush3.msra.mxu0 %v3656_v4  ;;  %2592 = vmatprep.subr.mxu1 %v3190_v62 }
  0x50   :  { %419 = vmatmul.mubr.f32.gmra.mxu0 %v48_v59  ;;  %2633 = vmatprep.subr.mxu0 %v3190_v62 }
  0x51   :  { %423 = vmatprep.mubr.f32.mxu0 %v55_v60  ;;  %2634 = vmatpush3.msra.mxu0 %v3665_v5 }
  0x52   :  { %2635 = vmatprep.subr.mxu0 %v3190_v62  ;;  %2593 = vmatpush3.msra.mxu1 %v3692_v8 }
  0x53   :  { %2636 = vmatpush3.msra.mxu0 %v3674_v6  ;;  %2594 = vmatprep.subr.mxu1 %v3190_v62 }
  0x54   :  { %424 = vmatmul.mubr.f32.gmra.mxu0 %v54_v61  ;;  %2637 = vmatprep.subr.mxu0 %v3190_v62 }
  0x55   :  { %2638 = vmatpush3.msra.mxu0 %v3683_v7  ;;  %2595 = vmatpush3.msra.mxu1 %v3701_v9 }
  0x56   :  { %2639 = vmatprep.subr.mxu0 %v3190_v62  ;;  %2596 = vmatprep.subr.mxu1 %v3190_v62 }
  0x57   :  { %2640 = vmatpush3.msra.mxu0 %v3692_v8  ;;  %2597 = vmatpush3.msra.mxu1 %v3710_v10 }
  0x58   :  { %2641 = vmatprep.subr.mxu0 %v3190_v62  ;;  %2598 = vmatprep.subr.mxu1 %v3190_v62 }
  0x59   :  { %2642 = vmatpush3.msra.mxu0 %v3701_v9  ;;  %2599 = vmatpush3.msra.mxu1 %v3723_v11 }
  0x5a   :  { %2643 = vmatprep.subr.mxu0 %v3190_v62  ;;  %2600 = vmatprep.subr.mxu1 %v3190_v62 }
  0x5b   :  { %2644 = vmatpush3.msra.mxu0 %v3710_v10  ;;  %2601 = vmatpush3.msra.mxu1 %v3732_v12 }
  0x5c   :  { %2645 = vmatprep.subr.mxu0 %v3190_v62  ;;  %2602 = vmatprep.subr.mxu1 %v3190_v62 }
  0x5d   :  { %2646 = vmatpush3.msra.mxu0 %v3723_v11  ;;  %2603 = vmatpush3.msra.mxu1 %v3741_v13 }
  0x5e   :  { %2647 = vmatprep.subr.mxu0 %v3190_v62  ;;  %2604 = vmatprep.subr.mxu1 %v3190_v62 }
  0x5f   :  { %2648 = vmatpush3.msra.mxu0 %v3732_v12  ;;  %2605 = vmatpush3.msra.mxu1 %v3750_v14 }
  0x60   :  { %2649 = vmatprep.subr.mxu0 %v3190_v62  ;;  %2606 = vmatprep.mubr.msk.f32.mxu1 %vm3191_vm0, %v3190_v62 }
  0x61   :  { %2650 = vmatpush3.msra.mxu0 %v3741_v13  ;;  %2653 = vmatprep.mubr.msk.f32.mxu0 %vm3191_vm0, %v3190_v62 }
  0x62   :  { %2651 = vmatprep.subr.mxu0 %v3190_v62  ;;  %2668 = vmatprep.subr.mxu1 %v3190_v62 }
  0x63   :  { %2652 = vmatpush3.msra.mxu0 %v3750_v14 }
  0x64   :  { %2715 = vmatprep.subr.mxu0 %v3190_v62 }
  0xe2   :  { %v2213_v15 = vpop.f32.mrf.mxu0 }
  0xe4   :  { %v2214_v16 = vpop.f32.mrf.mxu0 }
  0xe5   :  { %v2260_v19 = vpop.f32.mrf.mxu1  ;;  %v2215_v28 = vadd.f32 %v2214_v16, %v2213_v15 }
  0xe7   :  { %v2261_v21 = vpop.f32.mrf.mxu1  ;;  %v226_v32 = vadd.f32 %v2215_v28, %v2178_v30 }
  0xe8   :  { %v2216_v17 = vpop.f32.mrf.mxu0  ;;  %v2262_v33 = vadd.f32 %v2261_v21, %v2260_v19 }
  0xe9   :  { %v2263_v23 = vpop.f32.mrf.mxu1 }
  0xea   :  { %v2217_v18 = vpop.f32.mrf.mxu0  ;;  %v316_v38 = vadd.f32 %v2262_v33, %v226_v32 }
  0xeb   :  { %v2264_v25 = vpop.f32.mrf.mxu1  ;;  %v2218_v35 = vadd.f32 %v2217_v18, %v2216_v17 }
  0xec   :  { %v2219_v20 = vpop.f32.mrf.mxu0  ;;  %v2265_v41 = vadd.f32 %v2264_v25, %v2263_v23 }
  0xed   :  { %v2266_v27 = vpop.f32.mrf.mxu1  ;;  %v231_v40 = vadd.f32 %v2218_v35, %v2178_v30 }
  0xee   :  { %v2220_v22 = vpop.f32.mrf.mxu0 }
  0xef   :  { %v2267_v31 = vpop.f32.mrf.mxu1  ;;  %v2221_v42 = vadd.f32 %v2220_v22, %v2219_v20  ;;  %v321_v49 = vadd.f32 %v2265_v41, %v231_v40 }
  0xf0   :  { %v2222_v24 = vpop.f32.mrf.mxu0  ;;  %v2268_v51 = vadd.f32 %v2267_v31, %v2266_v27 }
  0xf1   :  { %v2269_v36 = vpop.f32.mrf.mxu1  ;;  %v236_v50 = vadd.f32 %v2221_v42, %v2178_v30 }
  0xf2   :  { %v2223_v26 = vpop.f32.mrf.mxu0 }
  0xf3   :  { %v2270_v44 = vpop.f32.mrf.mxu1  ;;  %v2224_v47 = vadd.f32 %v2223_v26, %v2222_v24  ;;  %v326_v59 = vadd.f32 %v2268_v51, %v236_v50 }
  0xf4   :  { %v2225_v29 = vpop.f32.mrf.mxu0  ;;  %v2271_v57 = vadd.f32 %v2270_v44, %v2269_v36 }
  0xf5   :  { %v2272_v53 = vpop.f32.mrf.mxu1  ;;  %v241_v56 = vadd.f32 %v2224_v47, %v2178_v30 }
  0xf6   :  { %v2226_v34 = vpop.f32.mrf.mxu0 }
  0xf7   :  { %v2227_v60 = vadd.f32 %v2226_v34, %v2225_v29  ;;  %v2273_v15 = vpop.f32.mrf.mxu1  ;;  %v331_v18 = vadd.f32 %v2271_v57, %v241_v56  ;;  %v3809_v29 = vld [vmem:[%s4865_s4] ss:$0 sm:$0xff] }
  0xf8   :  { %v2274_v21 = vadd.f32 %v2273_v15, %v2272_v53 }
  0xf9   :  { %v246_v20 = vadd.f32 %v2227_v60, %v2178_v30 }
  0xfb   :  { %v336_v26 = vadd.f32 %v2274_v21, %v246_v20 }
 0x104   :  { %v2307_v37 = vpop.f32.mrf.mxu0 }
 0x106   :  { %v2308_v39 = vpop.f32.mrf.mxu0 }
 0x107   :  { %v2309_v43 = vadd.f32 %v2308_v39, %v2307_v37 }
 0x108   :  { %v2310_v45 = vpop.f32.mrf.mxu0 }
 0x109   :  { %v406_v46 = vadd.f32 %v2309_v43, %v316_v38 }
 0x10a   :  { %v2311_v48 = vpop.f32.mrf.mxu0 }
 0x10b   :  { %v2312_v52 = vadd.f32 %v2311_v48, %v2310_v45  ;;  %2607 = vmatmul.mubr.f32.vlgmr.msra.gmra.mxu1 %v406_v46 }
 0x10c   :  { %v2313_v54 = vpop.f32.mrf.mxu0  ;;  %2609 = vmatprep.mubr.msk.f32.mxu1 %vm3191_vm0, %v3190_v62  ;;  %2669 = vmatpush3.msra.mxu1 %v3615_v63 }
 0x10d   :  { %v411_v55 = vadd.f32 %v2312_v52, %v321_v49  ;;  %2670 = vmatprep.subr.mxu1 %v3190_v62 }
 0x10e   :  { %v2314_v58 = vpop.f32.mrf.mxu0  ;;  %2671 = vmatpush3.msra.mxu1 %v3620_v0 }
 0x10f   :  { %v2315_v61 = vadd.f32 %v2314_v58, %v2313_v54  ;;  %2610 = vmatmul.mubr.f32.gmra.mxu1 %v411_v55  ;;  %2672 = vmatprep.subr.mxu1 %v3190_v62 }
 0x110   :  { %v2316_v16 = vpop.f32.mrf.mxu0  ;;  %2612 = vmatprep.mubr.msk.f32.mxu1 %vm3191_vm0, %v3190_v62  ;;  %2673 = vmatpush3.msra.mxu1 %v3629_v1 }
 0x111   :  { %v416_v17 = vadd.f32 %v2315_v61, %v326_v59  ;;  %2674 = vmatprep.subr.mxu1 %v3190_v62 }
 0x112   :  { %v2317_v19 = vpop.f32.mrf.mxu0  ;;  %2675 = vmatpush3.msra.mxu1 %v3638_v2 }
 0x113   :  { %v2318_v22 = vadd.f32 %v2317_v19, %v2316_v16  ;;  %2613 = vmatmul.mubr.f32.gmra.mxu1 %v416_v17  ;;  %2676 = vmatprep.subr.mxu1 %v3190_v62 }
 0x114   :  { %v2319_v23 = vpop.f32.mrf.mxu0  ;;  %2615 = vmatprep.mubr.msk.f32.mxu1 %vm3191_vm0, %v3190_v62  ;;  %2677 = vmatpush3.msra.mxu1 %v3647_v3 }
 0x115   :  { %v421_v24 = vadd.f32 %v2318_v22, %v331_v18  ;;  %2678 = vmatprep.subr.mxu1 %v3190_v62 }
 0x116   :  { %v2320_v25 = vpop.f32.mrf.mxu0  ;;  %2679 = vmatpush3.msra.mxu1 %v3656_v4 }
 0x117   :  { %v2321_v27 = vadd.f32 %v2320_v25, %v2319_v23  ;;  %2616 = vmatmul.mubr.f32.gmra.mxu1 %v421_v24  ;;  %2680 = vmatprep.subr.mxu1 %v3190_v62 }
 0x118   :  { %2618 = vmatprep.mubr.msk.f32.mxu1 %vm3191_vm0, %v3190_v62  ;;  %2681 = vmatpush3.msra.mxu1 %v3665_v5 }
 0x119   :  { %v426_v28 = vadd.f32 %v2321_v27, %v336_v26  ;;  %2682 = vmatprep.subr.mxu1 %v3190_v62 }
 0x11a   :  { %2683 = vmatpush3.msra.mxu1 %v3674_v6 }
 0x11b   :  { %2619 = vmatmul.mubr.f32.gmra.mxu1 %v426_v28  ;;  %2684 = vmatprep.subr.mxu1 %v3190_v62 }
 0x11c   :  { %2685 = vmatpush3.msra.mxu1 %v3683_v7  ;;  %2700 = vmatprep.mubr.msk.f32.mxu1 %vm3191_vm0, %v3190_v62 }
 0x11d   :  { %2686 = vmatprep.subr.mxu1 %v3190_v62 }
 0x11e   :  { %2687 = vmatpush3.msra.mxu1 %v3692_v8 }
 0x11f   :  { %2688 = vmatprep.subr.mxu1 %v3190_v62 }
 0x120   :  { %2689 = vmatpush3.msra.mxu1 %v3701_v9 }
 0x121   :  { %2690 = vmatprep.subr.mxu1 %v3190_v62 }
 0x122   :  { %2691 = vmatpush3.msra.mxu1 %v3710_v10 }
 0x123   :  { %2692 = vmatprep.subr.mxu1 %v3190_v62 }
 0x124   :  { %2693 = vmatpush3.msra.mxu1 %v3723_v11 }
 0x125   :  { %2694 = vmatprep.subr.mxu1 %v3190_v62 }
 0x126   :  { %2695 = vmatpush3.msra.mxu1 %v3732_v12 }
 0x127   :  { %2696 = vmatprep.subr.mxu1 %v3190_v62 }
 0x128   :  { %2697 = vmatpush3.msra.mxu1 %v3741_v13 }
 0x129   :  { %2698 = vmatprep.subr.mxu1 %v3190_v62 }
 0x12a   :  { %2699 = vmatpush3.msra.mxu1 %v3750_v14 }
 0x12b   :  { %2762 = vmatprep.subr.mxu1 %v3190_v62 }
 0x1cb   :  { %v518_v30 = vpop.f32.mrf.mxu1 }
 0x1cc   :  { %v519_v31 = vadd.f32 %v3809_v29, %v518_v30 }
 0x1cd   :  { %v2608_v32 = vpop.f32.mrf.mxu1 }
 0x1ce   :  { %2654 = vmatmul.mubr.f32.vlgmr.msra.gmra.mxu0 %v519_v31 }
 0x1cf   :  { %v523_v33 = vpop.f32.mrf.mxu1  ;;  %2656 = vmatprep.mubr.msk.f32.mxu0 %vm3191_vm0, %v3190_v62  ;;  %2716 = vmatpush3.msra.mxu0 %v3615_v63 }
 0x1d0   :  { %v524_v34 = vadd.f32 %v3809_v29, %v523_v33  ;;  %2717 = vmatprep.subr.mxu0 %v3190_v62 }
 0x1d1   :  { %v2611_v35 = vpop.f32.mrf.mxu1  ;;  %2718 = vmatpush3.msra.mxu0 %v3620_v0 }
 0x1d2   :  { %2657 = vmatmul.mubr.f32.gmra.mxu0 %v524_v34  ;;  %2719 = vmatprep.subr.mxu0 %v3190_v62 }
 0x1d3   :  { %v528_v36 = vpop.f32.mrf.mxu1  ;;  %2659 = vmatprep.mubr.msk.f32.mxu0 %vm3191_vm0, %v3190_v62  ;;  %2720 = vmatpush3.msra.mxu0 %v3629_v1 }
 0x1d4   :  { %v529_v37 = vadd.f32 %v3809_v29, %v528_v36  ;;  %2721 = vmatprep.subr.mxu0 %v3190_v62 }
 0x1d5   :  { %v2614_v38 = vpop.f32.mrf.mxu1  ;;  %2722 = vmatpush3.msra.mxu0 %v3638_v2 }
 0x1d6   :  { %2660 = vmatmul.mubr.f32.gmra.mxu0 %v529_v37  ;;  %2723 = vmatprep.subr.mxu0 %v3190_v62 }
 0x1d7   :  { %v533_v39 = vpop.f32.mrf.mxu1  ;;  %2662 = vmatprep.mubr.msk.f32.mxu0 %vm3191_vm0, %v3190_v62  ;;  %2724 = vmatpush3.msra.mxu0 %v3647_v3 }
 0x1d8   :  { %v534_v40 = vadd.f32 %v3809_v29, %v533_v39  ;;  %2725 = vmatprep.subr.mxu0 %v3190_v62 }
 0x1d9   :  { %v2617_v41 = vpop.f32.mrf.mxu1  ;;  %2726 = vmatpush3.msra.mxu0 %v3656_v4 }
 0x1da   :  { %2663 = vmatmul.mubr.f32.gmra.mxu0 %v534_v40  ;;  %2727 = vmatprep.subr.mxu0 %v3190_v62 }
 0x1db   :  { %v538_v42 = vpop.f32.mrf.mxu1  ;;  %2665 = vmatprep.mubr.msk.f32.mxu0 %vm3191_vm0, %v3190_v62  ;;  %2728 = vmatpush3.msra.mxu0 %v3665_v5 }
 0x1dc   :  { %v539_v43 = vadd.f32 %v3809_v29, %v538_v42  ;;  %2729 = vmatprep.subr.mxu0 %v3190_v62 }
 0x1dd   :  { %v2620_v44 = vpop.f32.mrf.mxu1  ;;  %2730 = vmatpush3.msra.mxu0 %v3674_v6 }
 0x1de   :  { %2666 = vmatmul.mubr.f32.gmra.mxu0 %v539_v43  ;;  %2731 = vmatprep.subr.mxu0 %v3190_v62 }
 0x1df   :  { %2732 = vmatpush3.msra.mxu0 %v3683_v7  ;;  %2747 = vmatprep.mubr.msk.f32.mxu0 %vm3191_vm0, %v3190_v62 }
 0x1e0   :  { %2733 = vmatprep.subr.mxu0 %v3190_v62 }
 0x1e1   :  { %2734 = vmatpush3.msra.mxu0 %v3692_v8 }
 0x1e2   :  { %2735 = vmatprep.subr.mxu0 %v3190_v62 }
 0x1e3   :  { %2736 = vmatpush3.msra.mxu0 %v3701_v9 }
 0x1e4   :  { %2737 = vmatprep.subr.mxu0 %v3190_v62 }
 0x1e5   :  { %2738 = vmatpush3.msra.mxu0 %v3710_v10 }
 0x1e6   :  { %2739 = vmatprep.subr.mxu0 %v3190_v62 }
 0x1e7   :  { %2740 = vmatpush3.msra.mxu0 %v3723_v11 }
 0x1e8   :  { %2741 = vmatprep.subr.mxu0 %v3190_v62 }
 0x1e9   :  { %2742 = vmatpush3.msra.mxu0 %v3732_v12 }
 0x1ea   :  { %2743 = vmatprep.subr.mxu0 %v3190_v62 }
 0x1eb   :  { %2744 = vmatpush3.msra.mxu0 %v3741_v13 }
 0x1ec   :  { %2745 = vmatprep.subr.mxu0 %v3190_v62 }
 0x1ed   :  { %2746 = vmatpush3.msra.mxu0 %v3750_v14 }
 0x1ee   :  { %2809 = vmatprep.subr.mxu0 %v3190_v62 }
 0x28e   :  { %v608_v45 = vpop.f32.mrf.mxu0 }
 0x28f   :  { %v609_v46 = vadd.f32 %v3809_v29, %v608_v45 }
 0x290   :  { %v2655_v47 = vpop.f32.mrf.mxu0 }
 0x291   :  { %2701 = vmatmul.mubr.f32.vlgmr.msra.gmra.mxu1 %v609_v46 }
 0x292   :  { %v613_v48 = vpop.f32.mrf.mxu0  ;;  %2703 = vmatprep.mubr.msk.f32.mxu1 %vm3191_vm0, %v3190_v62  ;;  %2763 = vmatpush3.msra.mxu1 %v3615_v63 }
 0x293   :  { %v614_v49 = vadd.f32 %v3809_v29, %v613_v48  ;;  %2764 = vmatprep.subr.mxu1 %v3190_v62 }
 0x294   :  { %v2658_v50 = vpop.f32.mrf.mxu0  ;;  %2765 = vmatpush3.msra.mxu1 %v3620_v0 }
 0x295   :  { %2704 = vmatmul.mubr.f32.gmra.mxu1 %v614_v49  ;;  %2766 = vmatprep.subr.mxu1 %v3190_v62 }
 0x296   :  { %v618_v51 = vpop.f32.mrf.mxu0  ;;  %2706 = vmatprep.mubr.msk.f32.mxu1 %vm3191_vm0, %v3190_v62  ;;  %2767 = vmatpush3.msra.mxu1 %v3629_v1 }
 0x297   :  { %v619_v52 = vadd.f32 %v3809_v29, %v618_v51  ;;  %2768 = vmatprep.subr.mxu1 %v3190_v62 }
 0x298   :  { %v2661_v53 = vpop.f32.mrf.mxu0  ;;  %2769 = vmatpush3.msra.mxu1 %v3638_v2 }
 0x299   :  { %2707 = vmatmul.mubr.f32.gmra.mxu1 %v619_v52  ;;  %2770 = vmatprep.subr.mxu1 %v3190_v62 }
 0x29a   :  { %v623_v54 = vpop.f32.mrf.mxu0  ;;  %2709 = vmatprep.mubr.msk.f32.mxu1 %vm3191_vm0, %v3190_v62  ;;  %2771 = vmatpush3.msra.mxu1 %v3647_v3 }
 0x29b   :  { %v624_v55 = vadd.f32 %v3809_v29, %v623_v54  ;;  %2772 = vmatprep.subr.mxu1 %v3190_v62 }
 0x29c   :  { %v2664_v56 = vpop.f32.mrf.mxu0  ;;  %2773 = vmatpush3.msra.mxu1 %v3656_v4 }
 0x29d   :  { %2710 = vmatmul.mubr.f32.gmra.mxu1 %v624_v55  ;;  %2774 = vmatprep.subr.mxu1 %v3190_v62 }
 0x29e   :  { %v628_v57 = vpop.f32.mrf.mxu0  ;;  %2712 = vmatprep.mubr.msk.f32.mxu1 %vm3191_vm0, %v3190_v62  ;;  %2775 = vmatpush3.msra.mxu1 %v3665_v5 }
 0x29f   :  { %v629_v58 = vadd.f32 %v3809_v29, %v628_v57  ;;  %2776 = vmatprep.subr.mxu1 %v3190_v62 }
 0x2a0   :  { %v2667_v59 = vpop.f32.mrf.mxu0  ;;  %2777 = vmatpush3.msra.mxu1 %v3674_v6 }
 0x2a1   :  { %2713 = vmatmul.mubr.f32.gmra.mxu1 %v629_v58  ;;  %2778 = vmatprep.subr.mxu1 %v3190_v62 }
 0x2a2   :  { %2779 = vmatpush3.msra.mxu1 %v3683_v7  ;;  %2794 = vmatprep.mubr.msk.f32.mxu1 %vm3191_vm0, %v3190_v62 }
 0x2a3   :  { %2780 = vmatprep.subr.mxu1 %v3190_v62 }
 0x2a4   :  { %2781 = vmatpush3.msra.mxu1 %v3692_v8 }
 0x2a5   :  { %2782 = vmatprep.subr.mxu1 %v3190_v62 }
 0x2a6   :  { %2783 = vmatpush3.msra.mxu1 %v3701_v9 }
 0x2a7   :  { %2784 = vmatprep.subr.mxu1 %v3190_v62 }
 0x2a8   :  { %2785 = vmatpush3.msra.mxu1 %v3710_v10 }
 0x2a9   :  { %2786 = vmatprep.subr.mxu1 %v3190_v62 }
 0x2aa   :  { %2787 = vmatpush3.msra.mxu1 %v3723_v11 }
 0x2ab   :  { %2788 = vmatprep.subr.mxu1 %v3190_v62 }
 0x2ac   :  { %2789 = vmatpush3.msra.mxu1 %v3732_v12 }
 0x2ad   :  { %2790 = vmatprep.subr.mxu1 %v3190_v62 }
 0x2ae   :  { %2791 = vmatpush3.msra.mxu1 %v3741_v13 }
 0x2af   :  { %2792 = vmatprep.subr.mxu1 %v3190_v62 }
 0x2b0   :  { %2793 = vmatpush3.msra.mxu1 %v3750_v14 }
 0x2b1   :  { %2856 = vmatprep.subr.mxu1 %v3190_v62 }
 0x351   :  { %v698_v60 = vpop.f32.mrf.mxu1 }
 0x352   :  { %v699_v61 = vadd.f32 %v3809_v29, %v698_v60 }
 0x353   :  { %v2702_v15 = vpop.f32.mrf.mxu1 }
 0x354   :  { %2748 = vmatmul.mubr.f32.vlgmr.msra.gmra.mxu0 %v699_v61 }
 0x355   :  { %v703_v16 = vpop.f32.mrf.mxu1  ;;  %2750 = vmatprep.mubr.msk.f32.mxu0 %vm3191_vm0, %v3190_v62  ;;  %2810 = vmatpush3.msra.mxu0 %v3615_v63 }
 0x356   :  { %v704_v17 = vadd.f32 %v3809_v29, %v703_v16  ;;  %2811 = vmatprep.subr.mxu0 %v3190_v62 }
 0x357   :  { %v2705_v18 = vpop.f32.mrf.mxu1  ;;  %2812 = vmatpush3.msra.mxu0 %v3620_v0 }
 0x358   :  { %2751 = vmatmul.mubr.f32.gmra.mxu0 %v704_v17  ;;  %2813 = vmatprep.subr.mxu0 %v3190_v62 }
 0x359   :  { %v708_v19 = vpop.f32.mrf.mxu1  ;;  %2753 = vmatprep.mubr.msk.f32.mxu0 %vm3191_vm0, %v3190_v62  ;;  %2814 = vmatpush3.msra.mxu0 %v3629_v1 }
 0x35a   :  { %v709_v20 = vadd.f32 %v3809_v29, %v708_v19  ;;  %2815 = vmatprep.subr.mxu0 %v3190_v62 }
 0x35b   :  { %v2708_v21 = vpop.f32.mrf.mxu1  ;;  %2816 = vmatpush3.msra.mxu0 %v3638_v2 }
 0x35c   :  { %2754 = vmatmul.mubr.f32.gmra.mxu0 %v709_v20  ;;  %2817 = vmatprep.subr.mxu0 %v3190_v62 }
 0x35d   :  { %v713_v22 = vpop.f32.mrf.mxu1  ;;  %2756 = vmatprep.mubr.msk.f32.mxu0 %vm3191_vm0, %v3190_v62  ;;  %2818 = vmatpush3.msra.mxu0 %v3647_v3 }
 0x35e   :  { %v714_v23 = vadd.f32 %v3809_v29, %v713_v22  ;;  %2819 = vmatprep.subr.mxu0 %v3190_v62 }
 0x35f   :  { %v2711_v24 = vpop.f32.mrf.mxu1  ;;  %2820 = vmatpush3.msra.mxu0 %v3656_v4 }
 0x360   :  { %2757 = vmatmul.mubr.f32.gmra.mxu0 %v714_v23  ;;  %2821 = vmatprep.subr.mxu0 %v3190_v62  ;;  %v4124_v23 = vld [vmem:[%s4863_s3 + $0x60] sm:$0xff] }
 0x361   :  { %v718_v25 = vpop.f32.mrf.mxu1  ;;  %2759 = vmatprep.mubr.msk.f32.mxu0 %vm3191_vm0, %v3190_v62  ;;  %2822 = vmatpush3.msra.mxu0 %v3665_v5 }
 0x362   :  { %v719_v26 = vadd.f32 %v3809_v29, %v718_v25  ;;  %2823 = vmatprep.subr.mxu0 %v3190_v62  ;;  %v4133_v25 = vld [vmem:[%s4863_s3 + $0x58] sm:$0xff] }
 0x363   :  { %v2714_v27 = vpop.f32.mrf.mxu1  ;;  %2824 = vmatpush3.msra.mxu0 %v3674_v6 }
 0x364   :  { %2760 = vmatmul.mubr.f32.gmra.mxu0 %v719_v26  ;;  %2825 = vmatprep.subr.mxu0 %v3190_v62 }
 0x365   :  { %2826 = vmatpush3.msra.mxu0 %v3683_v7  ;;  %2841 = vmatprep.mubr.msk.f32.mxu0 %vm3191_vm0, %v3190_v62 }
 0x366   :  { %2827 = vmatprep.subr.mxu0 %v3190_v62 }
 0x367   :  { %2828 = vmatpush3.msra.mxu0 %v3692_v8 }
 0x368   :  { %2829 = vmatprep.subr.mxu0 %v3190_v62 }
 0x369   :  { %2830 = vmatpush3.msra.mxu0 %v3701_v9 }
 0x36a   :  { %2831 = vmatprep.subr.mxu0 %v3190_v62 }
 0x36b   :  { %2832 = vmatpush3.msra.mxu0 %v3710_v10 }
 0x36c   :  { %2833 = vmatprep.subr.mxu0 %v3190_v62 }
 0x36d   :  { %2834 = vmatpush3.msra.mxu0 %v3723_v11 }
 0x36e   :  { %2835 = vmatprep.subr.mxu0 %v3190_v62 }
 0x36f   :  { %2836 = vmatpush3.msra.mxu0 %v3732_v12 }
 0x370   :  { %2837 = vmatprep.subr.mxu0 %v3190_v62 }
 0x371   :  { %2838 = vmatpush3.msra.mxu0 %v3741_v13 }
 0x372   :  { %2839 = vmatprep.subr.mxu0 %v3190_v62 }
 0x373   :  { %2840 = vmatpush3.msra.mxu0 %v3750_v14 }
 0x374   :  { %2903 = vmatprep.subr.mxu0 %v3190_v62 }
 0x414   :  { %v788_v28 = vpop.f32.mrf.mxu0 }
 0x415   :  { %v789_v30 = vadd.f32 %v3809_v29, %v788_v28  ;;  %v4141_v28 = vld [vmem:[%s4863_s3 + $0x50] sm:$0xff] }
 0x416   :  { %v2749_v31 = vpop.f32.mrf.mxu0 }
 0x417   :  { %2795 = vmatmul.mubr.f32.vlgmr.msra.gmra.mxu1 %v789_v30  ;;  %v4150_v31 = vld [vmem:[%s4863_s3 + $0x48] sm:$0xff] }
 0x418   :  { %v793_v32 = vpop.f32.mrf.mxu0  ;;  %2797 = vmatprep.mubr.msk.f32.mxu1 %vm3191_vm0, %v3190_v62  ;;  %2857 = vmatpush3.msra.mxu1 %v3615_v63 }
 0x419   :  { %v794_v33 = vadd.f32 %v3809_v29, %v793_v32  ;;  %2858 = vmatprep.subr.mxu1 %v3190_v62 }
 0x41a   :  { %v2752_v34 = vpop.f32.mrf.mxu0  ;;  %2859 = vmatpush3.msra.mxu1 %v3620_v0 }
 0x41b   :  { %2798 = vmatmul.mubr.f32.gmra.mxu1 %v794_v33  ;;  %2860 = vmatprep.subr.mxu1 %v3190_v62  ;;  %v4158_v34 = vld [vmem:[%s4863_s3 + $0x40] sm:$0xff] }
 0x41c   :  { %v798_v35 = vpop.f32.mrf.mxu0  ;;  %2800 = vmatprep.mubr.msk.f32.mxu1 %vm3191_vm0, %v3190_v62  ;;  %2861 = vmatpush3.msra.mxu1 %v3629_v1 }
 0x41d   :  { %v799_v36 = vadd.f32 %v3809_v29, %v798_v35  ;;  %2862 = vmatprep.subr.mxu1 %v3190_v62  ;;  %v4165_v35 = vld [vmem:[%s4863_s3 + $0x38] sm:$0xff] }
 0x41e   :  { %v2755_v37 = vpop.f32.mrf.mxu0  ;;  %2863 = vmatpush3.msra.mxu1 %v3638_v2 }
 0x41f   :  { %2801 = vmatmul.mubr.f32.gmra.mxu1 %v799_v36  ;;  %2864 = vmatprep.subr.mxu1 %v3190_v62  ;;  %v4174_v36 = vld [vmem:[%s4863_s3 + $0x30] sm:$0xff]  ;;  %v3183_v37 = vld [vmem:[%s4863_s3 + $0x28] sm:$0xff] }
 0x420   :  { %v803_v38 = vpop.f32.mrf.mxu0  ;;  %2803 = vmatprep.mubr.msk.f32.mxu1 %vm3191_vm0, %v3190_v62  ;;  %2865 = vmatpush3.msra.mxu1 %v3647_v3 }
 0x421   :  { %v804_v39 = vadd.f32 %v3809_v29, %v803_v38  ;;  %2866 = vmatprep.subr.mxu1 %v3190_v62  ;;  %v3184_v38 = vld [vmem:[%s4863_s3 + $0x20] sm:$0xff] }
 0x422   :  { %v2758_v40 = vpop.f32.mrf.mxu0  ;;  %2867 = vmatpush3.msra.mxu1 %v3656_v4 }
 0x423   :  { %2804 = vmatmul.mubr.f32.gmra.mxu1 %v804_v39  ;;  %2868 = vmatprep.subr.mxu1 %v3190_v62  ;;  %v3185_v39 = vld [vmem:[%s4863_s3 + $0x18] sm:$0xff]  ;;  %v3186_v40 = vld [vmem:[%s4863_s3 + $0x10] sm:$0xff] }
 0x424   :  { %v808_v41 = vpop.f32.mrf.mxu0  ;;  %2806 = vmatprep.mubr.msk.f32.mxu1 %vm3191_vm0, %v3190_v62  ;;  %2869 = vmatpush3.msra.mxu1 %v3665_v5 }
 0x425   :  { %v809_v42 = vadd.f32 %v3809_v29, %v808_v41  ;;  %2870 = vmatprep.subr.mxu1 %v3190_v62  ;;  %v3187_v41 = vld [vmem:[%s4863_s3 + $0x8] sm:$0xff] }
 0x426   :  { %v2761_v43 = vpop.f32.mrf.mxu0  ;;  %2871 = vmatpush3.msra.mxu1 %v3674_v6 }
 0x427   :  { %2807 = vmatmul.mubr.f32.gmra.mxu1 %v809_v42  ;;  %2872 = vmatprep.subr.mxu1 %v3190_v62  ;;  %v3188_v42 = vld [vmem:[%s4863_s3] sm:$0xff] }
 0x428   :  { %2873 = vmatpush3.msra.mxu1 %v3683_v7  ;;  %2888 = vmatprep.mubr.msk.f32.mxu1 %vm3191_vm0, %v3190_v62 }
 0x429   :  { %2874 = vmatprep.subr.mxu1 %v3190_v62 }
 0x42a   :  { %2875 = vmatpush3.msra.mxu1 %v3692_v8 }
 0x42b   :  { %2876 = vmatprep.subr.mxu1 %v3190_v62 }
 0x42c   :  { %2877 = vmatpush3.msra.mxu1 %v3701_v9 }
 0x42d   :  { %2878 = vmatprep.subr.mxu1 %v3190_v62 }
 0x42e   :  { %2879 = vmatpush3.msra.mxu1 %v3710_v10 }
 0x42f   :  { %2880 = vmatprep.subr.mxu1 %v3190_v62 }
 0x430   :  { %2881 = vmatpush3.msra.mxu1 %v3723_v11 }
 0x431   :  { %2882 = vmatprep.subr.mxu1 %v3190_v62 }
 0x432   :  { %2883 = vmatpush3.msra.mxu1 %v3732_v12 }
 0x433   :  { %2884 = vmatprep.subr.mxu1 %v3190_v62 }
 0x434   :  { %2885 = vmatpush3.msra.mxu1 %v3741_v13 }
 0x435   :  { %2886 = vmatprep.subr.mxu1 %v3190_v62 }
 0x436   :  { %2887 = vmatpush3.msra.mxu1 %v3750_v14 }
 0x437   :  { %2950 = vmatprep.subr.mxu1 %v3190_v62 }
 0x4d7   :  { %v878_v44 = vpop.f32.mrf.mxu1 }
 0x4d8   :  { %v879_v45 = vadd.f32 %v3809_v29, %v878_v44 }
 0x4d9   :  { %v2796_v46 = vpop.f32.mrf.mxu1 }
 0x4da   :  { %2842 = vmatmul.mubr.f32.vlgmr.msra.gmra.mxu0 %v879_v45 }
 0x4db   :  { %v883_v47 = vpop.f32.mrf.mxu1  ;;  %2844 = vmatprep.mubr.msk.f32.mxu0 %vm3191_vm0, %v3190_v62  ;;  %2904 = vmatpush3.msra.mxu0 %v3615_v63 }
 0x4dc   :  { %v884_v48 = vadd.f32 %v3809_v29, %v883_v47  ;;  %2905 = vmatprep.subr.mxu0 %v3190_v62 }
 0x4dd   :  { %v2799_v49 = vpop.f32.mrf.mxu1  ;;  %2906 = vmatpush3.msra.mxu0 %v3620_v0 }
 0x4de   :  { %2845 = vmatmul.mubr.f32.gmra.mxu0 %v884_v48  ;;  %2907 = vmatprep.subr.mxu0 %v3190_v62 }
 0x4df   :  { %v888_v50 = vpop.f32.mrf.mxu1  ;;  %2847 = vmatprep.mubr.msk.f32.mxu0 %vm3191_vm0, %v3190_v62  ;;  %2908 = vmatpush3.msra.mxu0 %v3629_v1 }
 0x4e0   :  { %v889_v51 = vadd.f32 %v3809_v29, %v888_v50  ;;  %2909 = vmatprep.subr.mxu0 %v3190_v62 }
 0x4e1   :  { %v2802_v52 = vpop.f32.mrf.mxu1  ;;  %2910 = vmatpush3.msra.mxu0 %v3638_v2 }
 0x4e2   :  { %2848 = vmatmul.mubr.f32.gmra.mxu0 %v889_v51  ;;  %2911 = vmatprep.subr.mxu0 %v3190_v62 }
 0x4e3   :  { %v893_v53 = vpop.f32.mrf.mxu1  ;;  %2850 = vmatprep.mubr.msk.f32.mxu0 %vm3191_vm0, %v3190_v62  ;;  %2912 = vmatpush3.msra.mxu0 %v3647_v3 }
 0x4e4   :  { %v894_v54 = vadd.f32 %v3809_v29, %v893_v53  ;;  %2913 = vmatprep.subr.mxu0 %v3190_v62 }
 0x4e5   :  { %v2805_v55 = vpop.f32.mrf.mxu1  ;;  %2914 = vmatpush3.msra.mxu0 %v3656_v4 }
 0x4e6   :  { %2851 = vmatmul.mubr.f32.gmra.mxu0 %v894_v54  ;;  %2915 = vmatprep.subr.mxu0 %v3190_v62 }
 0x4e7   :  { %v898_v56 = vpop.f32.mrf.mxu1  ;;  %2853 = vmatprep.mubr.msk.f32.mxu0 %vm3191_vm0, %v3190_v62  ;;  %2916 = vmatpush3.msra.mxu0 %v3665_v5 }
 0x4e8   :  { %v899_v57 = vadd.f32 %v3809_v29, %v898_v56  ;;  %2917 = vmatprep.subr.mxu0 %v3190_v62 }
 0x4e9   :  { %v2808_v58 = vpop.f32.mrf.mxu1  ;;  %2918 = vmatpush3.msra.mxu0 %v3674_v6 }
 0x4ea   :  { %2854 = vmatmul.mubr.f32.gmra.mxu0 %v899_v57  ;;  %2919 = vmatprep.subr.mxu0 %v3190_v62 }
 0x4eb   :  { %2920 = vmatpush3.msra.mxu0 %v3683_v7  ;;  %2935 = vmatprep.mubr.msk.f32.mxu0 %vm3191_vm0, %v3190_v62 }
 0x4ec   :  { %2921 = vmatprep.subr.mxu0 %v3190_v62 }
 0x4ed   :  { %2922 = vmatpush3.msra.mxu0 %v3692_v8 }
 0x4ee   :  { %2923 = vmatprep.subr.mxu0 %v3190_v62 }
 0x4ef   :  { %2924 = vmatpush3.msra.mxu0 %v3701_v9 }
 0x4f0   :  { %2925 = vmatprep.subr.mxu0 %v3190_v62 }
 0x4f1   :  { %2926 = vmatpush3.msra.mxu0 %v3710_v10 }
 0x4f2   :  { %2927 = vmatprep.subr.mxu0 %v3190_v62 }
 0x4f3   :  { %2928 = vmatpush3.msra.mxu0 %v3723_v11 }
 0x4f4   :  { %2929 = vmatprep.subr.mxu0 %v3190_v62 }
 0x4f5   :  { %2930 = vmatpush3.msra.mxu0 %v3732_v12 }
 0x4f6   :  { %2931 = vmatprep.subr.mxu0 %v3190_v62 }
 0x4f7   :  { %2932 = vmatpush3.msra.mxu0 %v3741_v13 }
 0x4f8   :  { %2933 = vmatprep.subr.mxu0 %v3190_v62 }
 0x4f9   :  { %2934 = vmatpush3.msra.mxu0 %v3750_v14 }
 0x4fa   :  { %2997 = vmatprep.subr.mxu0 %v3190_v62 }
 0x59a   :  { %v968_v59 = vpop.f32.mrf.mxu0 }
 0x59b   :  { %v969_v60 = vadd.f32 %v3809_v29, %v968_v59 }
 0x59c   :  { %v2843_v61 = vpop.f32.mrf.mxu0 }
 0x59d   :  { %2889 = vmatmul.mubr.f32.vlgmr.msra.gmra.mxu1 %v969_v60 }
 0x59e   :  { %v973_v15 = vpop.f32.mrf.mxu0  ;;  %2891 = vmatprep.mubr.msk.f32.mxu1 %vm3191_vm0, %v3190_v62  ;;  %2951 = vmatpush3.msra.mxu1 %v3615_v63 }
 0x59f   :  { %v974_v16 = vadd.f32 %v3809_v29, %v973_v15  ;;  %2952 = vmatprep.subr.mxu1 %v3190_v62 }
 0x5a0   :  { %v2846_v17 = vpop.f32.mrf.mxu0  ;;  %2953 = vmatpush3.msra.mxu1 %v3620_v0 }
 0x5a1   :  { %2892 = vmatmul.mubr.f32.gmra.mxu1 %v974_v16  ;;  %2954 = vmatprep.subr.mxu1 %v3190_v62 }
 0x5a2   :  { %v978_v18 = vpop.f32.mrf.mxu0  ;;  %2894 = vmatprep.mubr.msk.f32.mxu1 %vm3191_vm0, %v3190_v62  ;;  %2955 = vmatpush3.msra.mxu1 %v3629_v1 }
 0x5a3   :  { %v979_v19 = vadd.f32 %v3809_v29, %v978_v18  ;;  %2956 = vmatprep.subr.mxu1 %v3190_v62 }
 0x5a4   :  { %v2849_v63 = vpop.f32.mrf.mxu0  ;;  %2957 = vmatpush3.msra.mxu1 %v3638_v2 }
 0x5a5   :  { %2895 = vmatmul.mubr.f32.gmra.mxu1 %v979_v19  ;;  %2958 = vmatprep.subr.mxu1 %v3190_v62 }
 0x5a6   :  { %v983_v0 = vpop.f32.mrf.mxu0  ;;  %2897 = vmatprep.mubr.msk.f32.mxu1 %vm3191_vm0, %v3190_v62  ;;  %2959 = vmatpush3.msra.mxu1 %v3647_v3 }
 0x5a7   :  { %v984_v20 = vadd.f32 %v3809_v29, %v983_v0  ;;  %2960 = vmatprep.subr.mxu1 %v3190_v62 }
 0x5a8   :  { %v2852_v1 = vpop.f32.mrf.mxu0  ;;  %2961 = vmatpush3.msra.mxu1 %v3656_v4 }
 0x5a9   :  { %2898 = vmatmul.mubr.f32.gmra.mxu1 %v984_v20  ;;  %2962 = vmatprep.subr.mxu1 %v3190_v62 }
 0x5aa   :  { %v988_v2 = vpop.f32.mrf.mxu0  ;;  %2900 = vmatprep.mubr.msk.f32.mxu1 %vm3191_vm0, %v3190_v62  ;;  %2963 = vmatpush3.msra.mxu1 %v3665_v5 }
 0x5ab   :  { %v989_v21 = vadd.f32 %v3809_v29, %v988_v2  ;;  %2964 = vmatprep.subr.mxu1 %v3190_v62 }
 0x5ac   :  { %v2855_v3 = vpop.f32.mrf.mxu0  ;;  %2965 = vmatpush3.msra.mxu1 %v3674_v6 }
 0x5ad   :  { %2901 = vmatmul.mubr.f32.gmra.mxu1 %v989_v21  ;;  %2966 = vmatprep.subr.mxu1 %v3190_v62  ;;  %v1458_v3 = vld [vmem:[%s4866_s5 + $0x78] sm:$0xff] }
 0x5ae   :  { %2967 = vmatpush3.msra.mxu1 %v3683_v7  ;;  %2982 = vmatprep.mubr.msk.f32.mxu1 %vm3191_vm0, %v3190_v62 }
 0x5af   :  { %2968 = vmatprep.subr.mxu1 %v3190_v62 }
 0x5b0   :  { %2969 = vmatpush3.msra.mxu1 %v3692_v8  ;;  %v4099_v8 = vld [vmem:[%s4863_s3 + $0x78] sm:$0xff] }
 0x5b1   :  { %2970 = vmatprep.subr.mxu1 %v3190_v62 }
 0x5b2   :  { %2971 = vmatpush3.msra.mxu1 %v3701_v9 }
 0x5b3   :  { %2972 = vmatprep.subr.mxu1 %v3190_v62 }
 0x5b4   :  { %2973 = vmatpush3.msra.mxu1 %v3710_v10 }
 0x5b5   :  { %2974 = vmatprep.subr.mxu1 %v3190_v62 }
 0x5b6   :  { %2975 = vmatpush3.msra.mxu1 %v3723_v11  ;;  %v4107_v11 = vld [vmem:[%s4863_s3 + $0x70] sm:$0xff] }
 0x5b7   :  { %2976 = vmatprep.subr.mxu1 %v3190_v62 }
 0x5b8   :  { %2977 = vmatpush3.msra.mxu1 %v3732_v12 }
 0x5b9   :  { %2978 = vmatprep.subr.mxu1 %v3190_v62 }
 0x5ba   :  { %2979 = vmatpush3.msra.mxu1 %v3741_v13  ;;  %v4116_v13 = vld [vmem:[%s4863_s3 + $0x68] sm:$0xff] }
 0x5bb   :  { %2980 = vmatprep.subr.mxu1 %v3190_v62 }
 0x5bc   :  { %2981 = vmatpush3.msra.mxu1 %v3750_v14 }
 0x5bd   :  { %3044 = vmatprep.subr.mxu1 %v3190_v62 }
 0x65d   :  { %v1058_v4 = vpop.f32.mrf.mxu1 }
 0x65e   :  { %v1059_v5 = vadd.f32 %v3809_v29, %v1058_v4  ;;  %v1457_v4 = vld [vmem:[%s4866_s5 + $0x70] sm:$0xff] }
 0x65f   :  { %v2890_v6 = vpop.f32.mrf.mxu1 }
 0x660   :  { %2936 = vmatmul.mubr.f32.vlgmr.msra.gmra.mxu0 %v1059_v5  ;;  %v1455_v5 = vld [vmem:[%s4866_s5 + $0x60] sm:$0xff]  ;;  %v1454_v6 = vld [vmem:[%s4866_s5 + $0x58] sm:$0xff] }
 0x661   :  { %v1063_v7 = vpop.f32.mrf.mxu1  ;;  %2938 = vmatprep.mubr.msk.f32.mxu0 %vm3191_vm0, %v3190_v62  ;;  %2998 = vmatpush3.msra.mxu0 %v4099_v8 }
 0x662   :  { %v1064_v9 = vadd.f32 %v3809_v29, %v1063_v7  ;;  %2999 = vmatprep.subr.mxu0 %v3190_v62  ;;  %v1453_v7 = vld [vmem:[%s4866_s5 + $0x50] sm:$0xff] }
 0x663   :  { %v2893_v10 = vpop.f32.mrf.mxu1  ;;  %3000 = vmatpush3.msra.mxu0 %v4107_v11 }
 0x664   :  { %2939 = vmatmul.mubr.f32.gmra.mxu0 %v1064_v9  ;;  %3001 = vmatprep.subr.mxu0 %v3190_v62  ;;  %v1451_v9 = vld [vmem:[%s4866_s5 + $0x40] sm:$0xff]  ;;  %v1450_v10 = vld [vmem:[%s4866_s5 + $0x38] sm:$0xff] }
 0x665   :  { %v1068_v12 = vpop.f32.mrf.mxu1  ;;  %2941 = vmatprep.mubr.msk.f32.mxu0 %vm3191_vm0, %v3190_v62  ;;  %3002 = vmatpush3.msra.mxu0 %v4116_v13 }
 0x666   :  { %v1069_v14 = vadd.f32 %v3809_v29, %v1068_v12  ;;  %3003 = vmatprep.subr.mxu0 %v3190_v62  ;;  %v1448_v12 = vld [vmem:[%s4866_s5 + $0x28] sm:$0xff] }
 0x667   :  { %v2896_v22 = vpop.f32.mrf.mxu1  ;;  %3004 = vmatpush3.msra.mxu0 %v4124_v23 }
 0x668   :  { %2942 = vmatmul.mubr.f32.gmra.mxu0 %v1069_v14  ;;  %3005 = vmatprep.subr.mxu0 %v3190_v62  ;;  %v1446_v14 = vld [vmem:[%s4866_s5 + $0x18] sm:$0xff]  ;;  %v1445_v22 = vld [vmem:[%s4866_s5 + $0x10] sm:$0xff] }
 0x669   :  { %v1073_v24 = vpop.f32.mrf.mxu1  ;;  %2944 = vmatprep.mubr.msk.f32.mxu0 %vm3191_vm0, %v3190_v62  ;;  %3006 = vmatpush3.msra.mxu0 %v4133_v25 }
 0x66a   :  { %v1074_v26 = vadd.f32 %v3809_v29, %v1073_v24  ;;  %3007 = vmatprep.subr.mxu0 %v3190_v62  ;;  %v4317_v24 = vld [vmem:[%s4865_s4] ss:$0 sm:$0xff] }
 0x66b   :  { %v2899_v27 = vpop.f32.mrf.mxu1  ;;  %3008 = vmatpush3.msra.mxu0 %v4141_v28 }
 0x66c   :  { %2945 = vmatmul.mubr.f32.gmra.mxu0 %v1074_v26  ;;  %3009 = vmatprep.subr.mxu0 %v3190_v62 }
 0x66d   :  { %v1078_v30 = vpop.f32.mrf.mxu1  ;;  %2947 = vmatprep.mubr.msk.f32.mxu0 %vm3191_vm0, %v3190_v62  ;;  %3010 = vmatpush3.msra.mxu0 %v4150_v31 }
 0x66e   :  { %v1079_v32 = vadd.f32 %v3809_v29, %v1078_v30  ;;  %3011 = vmatprep.subr.mxu0 %v3190_v62 }
 0x66f   :  { %v2902_v33 = vpop.f32.mrf.mxu1  ;;  %3012 = vmatpush3.msra.mxu0 %v4158_v34 }
 0x670   :  { %2948 = vmatmul.mubr.f32.gmra.mxu0 %v1079_v32  ;;  %3013 = vmatprep.subr.mxu0 %v3190_v62 }
 0x671   :  { %3014 = vmatpush3.msra.mxu0 %v4165_v35  ;;  %3029 = vmatprep.mubr.msk.f32.mxu0 %vm3191_vm0, %v3190_v62 }
 0x672   :  { %3015 = vmatprep.subr.mxu0 %v3190_v62 }
 0x673   :  { %3016 = vmatpush3.msra.mxu0 %v4174_v36 }
 0x674   :  { %3017 = vmatprep.subr.mxu0 %v3190_v62 }
 0x675   :  { %3018 = vmatpush3.msra.mxu0 %v3183_v37 }
 0x676   :  { %3019 = vmatprep.subr.mxu0 %v3190_v62 }
 0x677   :  { %3020 = vmatpush3.msra.mxu0 %v3184_v38 }
 0x678   :  { %3021 = vmatprep.subr.mxu0 %v3190_v62 }
 0x679   :  { %3022 = vmatpush3.msra.mxu0 %v3185_v39 }
 0x67a   :  { %3023 = vmatprep.subr.mxu0 %v3190_v62 }
 0x67b   :  { %3024 = vmatpush3.msra.mxu0 %v3186_v40 }
 0x67c   :  { %3025 = vmatprep.subr.mxu0 %v3190_v62 }
 0x67d   :  { %3026 = vmatpush3.msra.mxu0 %v3187_v41 }
 0x67e   :  { %3027 = vmatprep.subr.mxu0 %v3190_v62 }
 0x67f   :  { %3028 = vmatpush3.msra.mxu0 %v3188_v42 }
 0x680   :  { %3091 = vmatprep.subr.mxu0 %v3190_v62 }
 0x720   :  { %v1148_v43 = vpop.f32.mrf.mxu0 }
 0x721   :  { %v1149_v44 = vadd.f32 %v3809_v29, %v1148_v43 }
 0x722   :  { %v2937_v45 = vpop.f32.mrf.mxu0 }
 0x723   :  { %2983 = vmatmul.mubr.f32.vlgmr.msra.gmra.mxu1 %v1149_v44 }
 0x724   :  { %v1153_v46 = vpop.f32.mrf.mxu0  ;;  %2985 = vmatprep.mubr.msk.f32.mxu1 %vm3191_vm0, %v3190_v62  ;;  %3045 = vmatpush3.msra.mxu1 %v4099_v8  ;;  %v1452_v8 = vld [vmem:[%s4866_s5 + $0x48] sm:$0xff] }
 0x725   :  { %v1154_v47 = vadd.f32 %v3809_v29, %v1153_v46  ;;  %3046 = vmatprep.subr.mxu1 %v3190_v62 }
 0x726   :  { %v2940_v48 = vpop.f32.mrf.mxu0  ;;  %3047 = vmatpush3.msra.mxu1 %v4107_v11  ;;  %v1449_v11 = vld [vmem:[%s4866_s5 + $0x30] sm:$0xff] }
 0x727   :  { %2986 = vmatmul.mubr.f32.gmra.mxu1 %v1154_v47  ;;  %3048 = vmatprep.subr.mxu1 %v3190_v62 }
 0x728   :  { %v1158_v49 = vpop.f32.mrf.mxu0  ;;  %2988 = vmatprep.mubr.msk.f32.mxu1 %vm3191_vm0, %v3190_v62  ;;  %3049 = vmatpush3.msra.mxu1 %v4116_v13  ;;  %v1447_v13 = vld [vmem:[%s4866_s5 + $0x20] sm:$0xff] }
 0x729   :  { %v1159_v50 = vadd.f32 %v3809_v29, %v1158_v49  ;;  %3050 = vmatprep.subr.mxu1 %v3190_v62 }
 0x72a   :  { %v2943_v51 = vpop.f32.mrf.mxu0  ;;  %3051 = vmatpush3.msra.mxu1 %v4124_v23 }
 0x72b   :  { %2989 = vmatmul.mubr.f32.gmra.mxu1 %v1159_v50  ;;  %3052 = vmatprep.subr.mxu1 %v3190_v62 }
 0x72c   :  { %v1163_v52 = vpop.f32.mrf.mxu0  ;;  %2991 = vmatprep.mubr.msk.f32.mxu1 %vm3191_vm0, %v3190_v62  ;;  %3053 = vmatpush3.msra.mxu1 %v4133_v25 }
 0x72d   :  { %v1164_v53 = vadd.f32 %v3809_v29, %v1163_v52  ;;  %3054 = vmatprep.subr.mxu1 %v3190_v62 }
 0x72e   :  { %v2946_v54 = vpop.f32.mrf.mxu0  ;;  %3055 = vmatpush3.msra.mxu1 %v4141_v28 }
 0x72f   :  { %2992 = vmatmul.mubr.f32.gmra.mxu1 %v1164_v53  ;;  %3056 = vmatprep.subr.mxu1 %v3190_v62 }
 0x730   :  { %v1168_v55 = vpop.f32.mrf.mxu0  ;;  %2994 = vmatprep.mubr.msk.f32.mxu1 %vm3191_vm0, %v3190_v62  ;;  %3057 = vmatpush3.msra.mxu1 %v4150_v31 }
 0x731   :  { %v1169_v56 = vadd.f32 %v3809_v29, %v1168_v55  ;;  %3058 = vmatprep.subr.mxu1 %v3190_v62 }
 0x732   :  { %v2949_v57 = vpop.f32.mrf.mxu0  ;;  %3059 = vmatpush3.msra.mxu1 %v4158_v34 }
 0x733   :  { %2995 = vmatmul.mubr.f32.gmra.mxu1 %v1169_v56  ;;  %3060 = vmatprep.subr.mxu1 %v3190_v62 }
 0x734   :  { %3061 = vmatpush3.msra.mxu1 %v4165_v35  ;;  %3076 = vmatprep.mubr.msk.f32.mxu1 %vm3191_vm0, %v3190_v62 }
 0x735   :  { %3062 = vmatprep.subr.mxu1 %v3190_v62 }
 0x736   :  { %3063 = vmatpush3.msra.mxu1 %v4174_v36 }
 0x737   :  { %3064 = vmatprep.subr.mxu1 %v3190_v62 }
 0x738   :  { %3065 = vmatpush3.msra.mxu1 %v3183_v37 }
 0x739   :  { %3066 = vmatprep.subr.mxu1 %v3190_v62 }
 0x73a   :  { %3067 = vmatpush3.msra.mxu1 %v3184_v38 }
 0x73b   :  { %3068 = vmatprep.subr.mxu1 %v3190_v62 }
 0x73c   :  { %3069 = vmatpush3.msra.mxu1 %v3185_v39 }
 0x73d   :  { %3070 = vmatprep.subr.mxu1 %v3190_v62 }
 0x73e   :  { %3071 = vmatpush3.msra.mxu1 %v3186_v40  ;;  %v1444_v40 = vld [vmem:[%s4866_s5 + $0x8] sm:$0xff] }
 0x73f   :  { %3072 = vmatprep.subr.mxu1 %v3190_v62 }
 0x740   :  { %3073 = vmatpush3.msra.mxu1 %v3187_v41  ;;  %v1443_v41 = vld [vmem:[%s4866_s5] sm:$0xff] }
 0x741   :  { %3074 = vmatprep.subr.mxu1 %v3190_v62 }
 0x742   :  { %3075 = vmatpush3.msra.mxu1 %v3188_v42  ;;  %v4359_v42 = vld [vmem:[%s4867_s6] ss:$0 sm:$0xff] }
 0x743   :  { %3138 = vmatprep.subr.mxu1 %v3190_v62  ;;  %2095 = vst [vmem:[%s4868_s7 + $0x8] sm:$0x3] %v4359_v42  ;;  %2097 = vst [vmem:[%s4868_s7 + $0x18] sm:$0x3] %v4359_v42 }
 0x744   :  { %2099 = vst [vmem:[%s4868_s7 + $0x28] sm:$0x3] %v4359_v42  ;;  %2101 = vst [vmem:[%s4868_s7 + $0x38] sm:$0x3] %v4359_v42 }
 0x745   :  { %2103 = vst [vmem:[%s4868_s7 + $0x48] sm:$0x3] %v4359_v42  ;;  %2105 = vst [vmem:[%s4868_s7 + $0x58] sm:$0x3] %v4359_v42 }
 0x746   :  { %2107 = vst [vmem:[%s4868_s7 + $0x68] sm:$0x3] %v4359_v42  ;;  %2109 = vst [vmem:[%s4868_s7 + $0x78] sm:$0x3] %v4359_v42 }
 0x747   :  { %2111 = vst [vmem:[%s4868_s7 + $0x88] sm:$0x3] %v4359_v42  ;;  %2113 = vst [vmem:[%s4868_s7 + $0x98] sm:$0x3] %v4359_v42 }
 0x748   :  { %2115 = vst [vmem:[%s4868_s7 + $0xa8] sm:$0x3] %v4359_v42  ;;  %2117 = vst [vmem:[%s4868_s7 + $0xb8] sm:$0x3] %v4359_v42 }
 0x749   :  { %2119 = vst [vmem:[%s4868_s7 + $0xc8] sm:$0x3] %v4359_v42  ;;  %2121 = vst [vmem:[%s4868_s7 + $0xd8] sm:$0x3] %v4359_v42 }
 0x74a   :  { %2123 = vst [vmem:[%s4868_s7 + $0xe8] sm:$0x3] %v4359_v42  ;;  %2125 = vst [vmem:[%s4868_s7 + $0xf8] sm:$0x3] %v4359_v42 }
 0x74b   :  { %2127 = vst [vmem:[%s4868_s7 + $0x108] sm:$0x3] %v4359_v42  ;;  %2129 = vst [vmem:[%s4868_s7 + $0x118] sm:$0x3] %v4359_v42 }
 0x74c   :  { %2131 = vst [vmem:[%s4868_s7 + $0x128] sm:$0x3] %v4359_v42  ;;  %2133 = vst [vmem:[%s4868_s7 + $0x138] sm:$0x3] %v4359_v42 }
 0x74d   :  { %2135 = vst [vmem:[%s4868_s7 + $0x148] sm:$0x3] %v4359_v42  ;;  %2137 = vst [vmem:[%s4868_s7 + $0x158] sm:$0x3] %v4359_v42 }
 0x74e   :  { %2139 = vst [vmem:[%s4868_s7 + $0x168] sm:$0x3] %v4359_v42  ;;  %2141 = vst [vmem:[%s4868_s7 + $0x178] sm:$0x3] %v4359_v42 }
 0x74f   :  { %2143 = vst [vmem:[%s4868_s7 + $0x188] sm:$0x3] %v4359_v42  ;;  %2145 = vst [vmem:[%s4868_s7 + $0x198] sm:$0x3] %v4359_v42 }
 0x750   :  { %2147 = vst [vmem:[%s4868_s7 + $0x1a8] sm:$0x3] %v4359_v42  ;;  %2149 = vst [vmem:[%s4868_s7 + $0x1b8] sm:$0x3] %v4359_v42 }
 0x751   :  { %2151 = vst [vmem:[%s4868_s7 + $0x1c8] sm:$0x3] %v4359_v42  ;;  %2153 = vst [vmem:[%s4868_s7 + $0x1d8] sm:$0x3] %v4359_v42 }
 0x752   :  { %2155 = vst [vmem:[%s4868_s7 + $0x1e8] sm:$0x3] %v4359_v42  ;;  %2157 = vst [vmem:[%s4868_s7 + $0x1f8] sm:$0x3] %v4359_v42 }
 0x753   :  { %2159 = vst [vmem:[%s4868_s7 + $0x208] sm:$0x3] %v4359_v42  ;;  %2161 = vst [vmem:[%s4868_s7 + $0x218] sm:$0x3] %v4359_v42 }
 0x754   :  { %2163 = vst [vmem:[%s4868_s7 + $0x228] sm:$0x3] %v4359_v42  ;;  %2165 = vst [vmem:[%s4868_s7 + $0x238] sm:$0x3] %v4359_v42 }
 0x755   :  { %2167 = vst [vmem:[%s4868_s7 + $0x248] sm:$0x3] %v4359_v42  ;;  %2169 = vst [vmem:[%s4868_s7 + $0x258] sm:$0x3] %v4359_v42 }
 0x756   :  { %2171 = vst [vmem:[%s4868_s7 + $0x268] sm:$0x3] %v4359_v42  ;;  %2173 = vst [vmem:[%s4868_s7 + $0x278] sm:$0x3] %v4359_v42 }
 0x7e3   :  { %v1238_v58 = vpop.f32.mrf.mxu1 }
 0x7e4   :  { %v1239_v59 = vadd.f32 %v3809_v29, %v1238_v58  ;;  %v1555_v58 = vlaneseq }
 0x7e5   :  { %v2984_v60 = vpop.f32.mrf.mxu1 }
 0x7e6   :  { %3030 = vmatmul.mubr.f32.vlgmr.msra.gmra.mxu0 %v1239_v59  ;;  %v3192_v59 = vmov 1966171168  }
 0x7e7   :  { %v1243_v61 = vpop.f32.mrf.mxu1  ;;  %3032 = vmatprep.mubr.msk.f32.mxu0 %vm3191_vm0, %v3190_v62  ;;  %3092 = vmatpush3.msra.mxu0 %v1458_v3  ;;  %v1567_v60 = vunpack.c.l.s4 %v3192_v59 }
 0x7e8   :  { %v1244_v15 = vadd.f32 %v3809_v29, %v1243_v61  ;;  %3093 = vmatprep.subr.mxu0 %v3190_v62  ;;  %v4532_v61 = vshrl.u32 %v1555_v58, 7 }
 0x7e9   :  { %v2987_v16 = vpop.f32.mrf.mxu1  ;;  %3094 = vmatpush3.msra.mxu0 %v1457_v4 }
 0x7ea   :  { %3033 = vmatmul.mubr.f32.gmra.mxu0 %v1244_v15  ;;  %3095 = vmatprep.subr.mxu0 %v3190_v62  ;;  %v1568_v15 = vunpack.c.0.s8 %v1567_v60  ;;  %vm1558_vm1 = vcmp.eq.s32.totalorder %v4532_v61, 0 }
 0x7eb   :  { %v1248_v17 = vpop.f32.mrf.mxu1  ;;  %3035 = vmatprep.mubr.msk.f32.mxu0 %vm3191_vm0, %v3190_v62 }
 0x7ec   :  { %v1249_v18 = vadd.f32 %v3809_v29, %v1248_v17  ;;  %v4535_v16 = vsub.s32 %v1568_v15, %v4532_v61 }
 0x7ed   :  { %v2990_v19 = vpop.f32.mrf.mxu1 }
 0x7ee   :  { %3036 = vmatmul.mubr.f32.gmra.mxu0 %v1249_v18 }
 0x7ef   :  { %v1253_v63 = vpop.f32.mrf.mxu1  ;;  %3038 = vmatprep.mubr.msk.f32.mxu0 %vm3191_vm0, %v3190_v62 }
 0x7f0   :  { %v1254_v0 = vadd.f32 %v3809_v29, %v1253_v63 }
 0x7f1   :  { %v2993_v20 = vpop.f32.mrf.mxu1 }
 0x7f2   :  { %3039 = vmatmul.mubr.f32.gmra.mxu0 %v1254_v0  ;;  %v4540_v0 = vsub.s32 0, %v4532_v61 }
 0x7f3   :  { %v1258_v1 = vpop.f32.mrf.mxu1  ;;  %3041 = vmatprep.mubr.msk.f32.mxu0 %vm3191_vm0, %v3190_v62 }
 0x7f4   :  { %v1259_v2 = vadd.f32 %v3809_v29, %v1258_v1  ;;  %v1456_v29 = vld [vmem:[%s4866_s5 + $0x68] sm:$0xff] }
 0x7f5   :  { %v2996_v21 = vpop.f32.mrf.mxu1  ;;  %3096 = vmatpush3.msra.mxu0 %v1456_v29 }
 0x7f6   :  { %3042 = vmatmul.mubr.f32.gmra.mxu0 %v1259_v2  ;;  %3097 = vmatprep.subr.mxu0 %v3190_v62 }
 0x7f7   :  { %3123 = vmatprep.mubr.msk.f32.mxu0 %vm3191_vm0, %v3190_v62  ;;  %3098 = vmatpush3.msra.mxu0 %v1455_v5 }
 0x7f8   :  { %3099 = vmatprep.subr.mxu0 %v3190_v62 }
 0x7f9   :  { %3100 = vmatpush3.msra.mxu0 %v1454_v6 }
 0x7fa   :  { %3101 = vmatprep.subr.mxu0 %v3190_v62 }
 0x7fb   :  { %3102 = vmatpush3.msra.mxu0 %v1453_v7 }
 0x7fc   :  { %3103 = vmatprep.subr.mxu0 %v3190_v62 }
 0x7fd   :  { %3104 = vmatpush3.msra.mxu0 %v1452_v8 }
 0x7fe   :  { %3105 = vmatprep.subr.mxu0 %v3190_v62 }
 0x7ff   :  { %3106 = vmatpush3.msra.mxu0 %v1451_v9 }
 0x800   :  { %3107 = vmatprep.subr.mxu0 %v3190_v62 }
 0x801   :  { %3108 = vmatpush3.msra.mxu0 %v1450_v10 }
 0x802   :  { %3109 = vmatprep.subr.mxu0 %v3190_v62 }
 0x803   :  { %3110 = vmatpush3.msra.mxu0 %v1449_v11 }
 0x804   :  { %3111 = vmatprep.subr.mxu0 %v3190_v62 }
 0x805   :  { %3112 = vmatpush3.msra.mxu0 %v1448_v12 }
 0x806   :  { %3113 = vmatprep.subr.mxu0 %v3190_v62 }
 0x807   :  { %3114 = vmatpush3.msra.mxu0 %v1447_v13 }
 0x808   :  { %3115 = vmatprep.subr.mxu0 %v3190_v62 }
 0x809   :  { %3116 = vmatpush3.msra.mxu0 %v1446_v14 }
 0x80a   :  { %3117 = vmatprep.subr.mxu0 %v3190_v62 }
 0x80b   :  { %3118 = vmatpush3.msra.mxu0 %v1445_v22 }
 0x80c   :  { %3119 = vmatprep.subr.mxu0 %v3190_v62 }
 0x80d   :  { %3120 = vmatpush3.msra.mxu0 %v1444_v40 }
 0x80e   :  { %3121 = vmatprep.subr.mxu0 %v3190_v62 }
 0x80f   :  { %3122 = vmatpush3.msra.mxu0 %v1443_v41 }
 0x8a6   :  { %v1328_v23 = vpop.f32.mrf.mxu0 }
 0x8a7   :  { %v1329_v25 = vadd.f32 %v4317_v24, %v1328_v23 }
 0x8a8   :  { %v3031_v26 = vpop.f32.mrf.mxu0 }
 0x8a9   :  { %3077 = vmatmul.mubr.f32.vlgmr.msra.gmra.mxu1 %v1329_v25 }
 0x8aa   :  { %v1333_v27 = vpop.f32.mrf.mxu0  ;;  %3079 = vmatprep.mubr.msk.f32.mxu1 %vm3191_vm0, %v3190_v62  ;;  %3154 = vmatpush3.msra.mxu1 %v1458_v3 }
 0x8ab   :  { %v1334_v28 = vadd.f32 %v4317_v24, %v1333_v27  ;;  %3139 = vmatprep.subr.mxu1 %v3190_v62 }
 0x8ac   :  { %v3034_v30 = vpop.f32.mrf.mxu0  ;;  %3155 = vmatpush3.msra.mxu1 %v1457_v4 }
 0x8ad   :  { %3080 = vmatmul.mubr.f32.gmra.mxu1 %v1334_v28  ;;  %3140 = vmatprep.subr.mxu1 %v3190_v62 }
 0x8ae   :  { %v1338_v31 = vpop.f32.mrf.mxu0  ;;  %3082 = vmatprep.mubr.msk.f32.mxu1 %vm3191_vm0, %v3190_v62  ;;  %3156 = vmatpush3.msra.mxu1 %v1456_v29 }
 0x8af   :  { %v1339_v32 = vadd.f32 %v4317_v24, %v1338_v31  ;;  %3141 = vmatprep.subr.mxu1 %v3190_v62 }
 0x8b0   :  { %v3037_v33 = vpop.f32.mrf.mxu0  ;;  %3157 = vmatpush3.msra.mxu1 %v1455_v5 }
 0x8b1   :  { %3083 = vmatmul.mubr.f32.gmra.mxu1 %v1339_v32  ;;  %3142 = vmatprep.subr.mxu1 %v3190_v62 }
 0x8b2   :  { %v1343_v34 = vpop.f32.mrf.mxu0  ;;  %3085 = vmatprep.mubr.msk.f32.mxu1 %vm3191_vm0, %v3190_v62  ;;  %3158 = vmatpush3.msra.mxu1 %v1454_v6 }
 0x8b3   :  { %v1344_v35 = vadd.f32 %v4317_v24, %v1343_v34  ;;  %3143 = vmatprep.subr.mxu1 %v3190_v62 }
 0x8b4   :  { %v3040_v36 = vpop.f32.mrf.mxu0  ;;  %3159 = vmatpush3.msra.mxu1 %v1453_v7 }
 0x8b5   :  { %3086 = vmatmul.mubr.f32.gmra.mxu1 %v1344_v35  ;;  %3144 = vmatprep.subr.mxu1 %v3190_v62 }
 0x8b6   :  { %v1348_v37 = vpop.f32.mrf.mxu0  ;;  %3088 = vmatprep.mubr.msk.f32.mxu1 %vm3191_vm0, %v3190_v62  ;;  %3160 = vmatpush3.msra.mxu1 %v1452_v8 }
 0x8b7   :  { %v1349_v38 = vadd.f32 %v4317_v24, %v1348_v37  ;;  %3145 = vmatprep.subr.mxu1 %v3190_v62 }
 0x8b8   :  { %v3043_v39 = vpop.f32.mrf.mxu0  ;;  %3161 = vmatpush3.msra.mxu1 %v1451_v9 }
 0x8b9   :  { %3089 = vmatmul.mubr.f32.gmra.mxu1 %v1349_v38  ;;  %3146 = vmatprep.subr.mxu1 %v3190_v62 }
 0x8ba   :  { %3162 = vmatpush3.msra.mxu1 %v1450_v10  ;;  %3132 = vmatprep.mubr.msk.f32.mxu1 %vm3191_vm0, %v3190_v62 }
 0x8bb   :  { %3147 = vmatprep.subr.mxu1 %v3190_v62 }
 0x8bc   :  { %3163 = vmatpush3.msra.mxu1 %v1449_v11 }
 0x8bd   :  { %3148 = vmatprep.subr.mxu1 %v3190_v62 }
 0x8be   :  { %3164 = vmatpush3.msra.mxu1 %v1448_v12 }
 0x8bf   :  { %3149 = vmatprep.subr.mxu1 %v3190_v62 }
 0x8c0   :  { %3165 = vmatpush3.msra.mxu1 %v1447_v13 }
 0x8c1   :  { %3150 = vmatprep.subr.mxu1 %v3190_v62 }
 0x8c2   :  { %3166 = vmatpush3.msra.mxu1 %v1446_v14 }
 0x8c3   :  { %3151 = vmatprep.subr.mxu1 %v3190_v62 }
 0x8c4   :  { %3167 = vmatpush3.msra.mxu1 %v1445_v22 }
 0x8c5   :  { %3152 = vmatprep.subr.mxu1 %v3190_v62 }
 0x8c6   :  { %3168 = vmatpush3.msra.mxu1 %v1444_v40 }
 0x8c7   :  { %3153 = vmatprep.subr.mxu1 %v3190_v62 }
 0x8c8   :  { %3169 = vmatpush3.msra.mxu1 %v1443_v41 }
 0x969   :  { %v1418_v43 = vpop.f32.mrf.mxu1 }
 0x96a   :  { %v1419_v44 = vadd.f32 %v4317_v24, %v1418_v43 }
 0x96b   :  { %v3078_v45 = vpop.f32.mrf.mxu1 }
 0x96c   :  { %3124 = vmatmul.mubr.f32.vlgmr.msra.gmra.mxu0 %v1419_v44 }
 0x96d   :  { %v1423_v46 = vpop.f32.mrf.mxu1  ;;  %3126 = vmatprep.mubr.msk.f32.mxu0 %vm3191_vm0, %v3190_v62 }
 0x96e   :  { %v1424_v47 = vadd.f32 %v4317_v24, %v1423_v46 }
 0x96f   :  { %v3081_v48 = vpop.f32.mrf.mxu1 }
 0x970   :  { %3127 = vmatmul.mubr.f32.gmra.mxu0 %v1424_v47 }
 0x971   :  { %v1428_v49 = vpop.f32.mrf.mxu1  ;;  %3129 = vmatprep.mubr.msk.f32.mxu0 %vm3191_vm0, %v3190_v62 }
 0x972   :  { %v1429_v50 = vadd.f32 %v4317_v24, %v1428_v49 }
 0x973   :  { %v3084_v51 = vpop.f32.mrf.mxu1 }
 0x974   :  { %3130 = vmatmul.mubr.f32.gmra.mxu0 %v1429_v50 }
 0x975   :  { %v1433_v52 = vpop.f32.mrf.mxu1 }
 0x976   :  { %v1434_v53 = vadd.f32 %v4317_v24, %v1433_v52 }
 0x977   :  { %v3087_v54 = vpop.f32.mrf.mxu1 }
 0x978   :  { %3133 = vmatmul.mubr.f32.vlgmr.msra.gmra.mxu1 %v1434_v53 }
 0x979   :  { %v1438_v55 = vpop.f32.mrf.mxu1  ;;  %3135 = vmatprep.mubr.msk.f32.mxu1 %vm3191_vm0, %v3190_v62 }
 0x97a   :  { %v1439_v56 = vadd.f32 %v4317_v24, %v1438_v55 }
 0x97b   :  { %v3090_v57 = vpop.f32.mrf.mxu1 }
 0x97c   :  { %3136 = vmatmul.mubr.f32.gmra.mxu1 %v1439_v56 }
 0xa2c   :  { %v1531_v17 = vpop.f32.mrf.mxu0 }
 0xa2d   :  { %v1532_v18 = vadd.f32 %v4359_v42, %v1531_v17 }
 0xa2e   :  { %v3125_v19 = vpop.f32.mrf.mxu0 }
 0xa2f   :  { %v1565_v63 = vcombine.high %v1532_v18, %v1532_v18  ;;  %v1572_v62 = vrot.slane %v1532_v18, %v4535_v16 }
 0xa30   :  { %v1536_v20 = vpop.f32.mrf.mxu0 }
 0xa31   :  { %v1579_v1 = vrot.slane %v1565_v63, %v4535_v16  ;;  %v1580_v2 = vcombine.high %v1572_v62, %v1572_v62  ;;  %v1588_v21 = vrot.slane %v1572_v62, %v4535_v16  ;;  %v1537_v3 = vadd.f32 %v4359_v42, %v1536_v20 }
 0xa32   :  { %v3128_v4 = vpop.f32.mrf.mxu0 }
 0xa33   :  { %v1581_v29 = vcombine.high %v1579_v1, %v1579_v1  ;;  %v1595_v5 = vrot.slane %v1579_v1, %v4535_v16  ;;  %v1602_v6 = vrot.slane %v1580_v2, %v4535_v16  ;;  %v1610_v7 = vcombine.high %v1588_v21, %v1588_v21 }
 0xa34   :  { %v1817_v8 = vrot.slane %v1588_v21, %v4540_v0  ;;  %v1614_v9 = vcombine.high %v1537_v3, %v1537_v3  ;;  %v1621_v10 = vrot.slane %v1537_v3, %v4535_v16  ;;  %v1541_v11 = vpop.f32.mrf.mxu0 }
 0xa35   :  { %v1609_v12 = vrot.slane %v1581_v29, %v4535_v16  ;;  %v1611_v13 = vcombine.high %v1595_v5, %v1595_v5  ;;  %v1612_v14 = vcombine.high %v1602_v6, %v1602_v6  ;;  %v1821_v22 = vrot.slane %v1602_v6, %v4540_v0 }
 0xa36   :  { %v1825_v23 = vrot.slane %v1610_v7, %v4540_v0  ;;  %v1833_v24 = vrot.slane %v1595_v5, %v4540_v0  ;;  %v2014_v25 = vsel %vm1558_vm1, %v1817_v8, %v4359_v42  ;;  %v1628_v26 = vrot.slane %v1614_v9, %v4535_v16  ;;  %v3131_v27 = vpop.f32.mrf.mxu0 }
 0xa37   :  { %v1613_v28 = vcombine.high %v1609_v12, %v1609_v12  ;;  %v1829_v30 = vrot.slane %v1612_v14, %v4540_v0  ;;  %v1837_v31 = vrot.slane %v1609_v12, %v4540_v0  ;;  %v1841_v32 = vrot.slane %v1611_v13, %v4540_v0  ;;  %2094 = vst [vmem:[%s4868_s7] sm:$0xff] %v2014_v25 }
 0xa38   :  { %v2016_v33 = vsel %vm1558_vm1, %v1821_v22, %v4359_v42  ;;  %v2018_v34 = vsel %vm1558_vm1, %v1825_v23, %v4359_v42  ;;  %v2022_v35 = vsel %vm1558_vm1, %v1833_v24, %v4359_v42  ;;  %v1629_v36 = vcombine.high %v1621_v10, %v1621_v10  ;;  %v1546_v37 = vpop.f32.mrf.mxu1 }
 0xa39   :  { %v1845_v38 = vrot.slane %v1613_v28, %v4540_v0  ;;  %v2020_v39 = vsel %vm1558_vm1, %v1829_v30, %v4359_v42  ;;  %v2024_v40 = vsel %vm1558_vm1, %v1837_v31, %v4359_v42  ;;  %v2026_v41 = vsel %vm1558_vm1, %v1841_v32, %v4359_v42  ;;  %2096 = vst [vmem:[%s4868_s7 + $0x10] sm:$0xff] %v2016_v33 }
 0xa3a   :  { %2098 = vst [vmem:[%s4868_s7 + $0x20] sm:$0xff] %v2018_v34  ;;  %2102 = vst [vmem:[%s4868_s7 + $0x40] sm:$0xff] %v2022_v35  ;;  %v1630_v43 = vcombine.high %v1628_v26, %v1628_v26  ;;  %v1637_v44 = vrot.slane %v1621_v10, %v4535_v16  ;;  %v1644_v45 = vrot.slane %v1628_v26, %v4535_v16  ;;  %v3134_v47 = vpop.f32.mrf.mxu1 }
 0xa3b   :  { %2100 = vst [vmem:[%s4868_s7 + $0x30] sm:$0xff] %v2020_v39  ;;  %2104 = vst [vmem:[%s4868_s7 + $0x50] sm:$0xff] %v2024_v40  ;;  %v1651_v46 = vrot.slane %v1629_v36, %v4535_v16  ;;  %v2028_v48 = vsel %vm1558_vm1, %v1845_v38, %v4359_v42  ;;  %v1542_v49 = vadd.f32 %v4359_v42, %v1541_v11 }
 0xa3c   :  { %2106 = vst [vmem:[%s4868_s7 + $0x60] sm:$0xff] %v2026_v41  ;;  %v1547_v50 = vadd.f32 %v4359_v42, %v1546_v37  ;;  %2108 = vst [vmem:[%s4868_s7 + $0x70] sm:$0xff] %v2028_v48  ;;  %v1658_v51 = vrot.slane %v1630_v43, %v4535_v16  ;;  %v1659_v52 = vcombine.high %v1637_v44, %v1637_v44  ;;  %v1551_v55 = vpop.f32.mrf.mxu1 }
 0xa3d   :  { %v1660_v53 = vcombine.high %v1644_v45, %v1644_v45  ;;  %v1661_v54 = vcombine.high %v1651_v46, %v1651_v46  ;;  %v1849_v56 = vrot.slane %v1637_v44, %v4540_v0  ;;  %v1853_v57 = vrot.slane %v1651_v46, %v4540_v0 }
 0xa3e   :  { %v1865_v58 = vrot.slane %v1644_v45, %v4540_v0  ;;  %v1663_v59 = vcombine.high %v1542_v49, %v1542_v49  ;;  %v1662_v60 = vcombine.high %v1658_v51, %v1658_v51  ;;  %v1857_v15 = vrot.slane %v1659_v52, %v4540_v0  ;;  %v3137_v19 = vpop.f32.mrf.mxu1 }
 0xa3f   :  { %v1861_v17 = vrot.slane %v1661_v54, %v4540_v0  ;;  %v1869_v18 = vrot.slane %v1658_v51, %v4540_v0  ;;  %v1873_v63 = vrot.slane %v1660_v53, %v4540_v0  ;;  %v2030_v62 = vsel %vm1558_vm1, %v1849_v56, %v4359_v42 }
 0xa40   :  { %v2032_v20 = vsel %vm1558_vm1, %v1853_v57, %v4359_v42  ;;  %v2038_v1 = vsel %vm1558_vm1, %v1865_v58, %v4359_v42  ;;  %v1877_v2 = vrot.slane %v1662_v60, %v4540_v0  ;;  %v2034_v21 = vsel %vm1558_vm1, %v1857_v15, %v4359_v42  ;;  %2110 = vst [vmem:[%s4868_s7 + $0x80] sm:$0xff] %v2030_v62 }
 0xa41   :  { %v2036_v3 = vsel %vm1558_vm1, %v1861_v17, %v4359_v42  ;;  %v2040_v4 = vsel %vm1558_vm1, %v1869_v18, %v4359_v42  ;;  %2112 = vst [vmem:[%s4868_s7 + $0x90] sm:$0xff] %v2032_v20  ;;  %2118 = vst [vmem:[%s4868_s7 + $0xc0] sm:$0xff] %v2038_v1  ;;  %v2042_v29 = vsel %vm1558_vm1, %v1873_v63, %v4359_v42 }
 0xa42   :  { %2114 = vst [vmem:[%s4868_s7 + $0xa0] sm:$0xff] %v2034_v21  ;;  %2116 = vst [vmem:[%s4868_s7 + $0xb0] sm:$0xff] %v2036_v3  ;;  %v1670_v5 = vrot.slane %v1542_v49, %v4535_v16  ;;  %v1677_v6 = vrot.slane %v1663_v59, %v4535_v16  ;;  %v1712_v7 = vcombine.high %v1547_v50, %v1547_v50 }
 0xa43   :  { %2120 = vst [vmem:[%s4868_s7 + $0xd0] sm:$0xff] %v2040_v4  ;;  %v2044_v8 = vsel %vm1558_vm1, %v1877_v2, %v4359_v42  ;;  %2122 = vst [vmem:[%s4868_s7 + $0xe0] sm:$0xff] %v2042_v29  ;;  %v1719_v9 = vrot.slane %v1547_v50, %v4535_v16  ;;  %v4670_v10 = vadd.f32 %v4359_v42, %v1551_v55 }
 0xa44   :  { %2124 = vst [vmem:[%s4868_s7 + $0xf0] sm:$0xff] %v2044_v8  ;;  %v1678_v11 = vcombine.high %v1670_v5, %v1670_v5  ;;  %v1679_v12 = vcombine.high %v1677_v6, %v1677_v6  ;;  %v1686_v13 = vrot.slane %v1670_v5, %v4535_v16  ;;  %v1693_v14 = vrot.slane %v1677_v6, %v4535_v16 }
 0xa45   :  { %v1726_v22 = vrot.slane %v1712_v7, %v4535_v16  ;;  %v1727_v23 = vcombine.high %v1719_v9, %v1719_v9  ;;  %v1735_v24 = vrot.slane %v1719_v9, %v4535_v16  ;;  %v1761_v25 = vcombine.high %v4670_v10, %v4670_v10 }
 0xa46   :  { %v1700_v26 = vrot.slane %v1678_v11, %v4535_v16  ;;  %v1707_v27 = vrot.slane %v1679_v12, %v4535_v16  ;;  %v1708_v28 = vcombine.high %v1686_v13, %v1686_v13  ;;  %v1709_v30 = vcombine.high %v1693_v14, %v1693_v14 }
 0xa47   :  { %v1881_v31 = vrot.slane %v1686_v13, %v4540_v0  ;;  %v1897_v32 = vrot.slane %v1693_v14, %v4540_v0  ;;  %v1728_v33 = vcombine.high %v1726_v22, %v1726_v22  ;;  %v1742_v34 = vrot.slane %v1726_v22, %v4535_v16 }
 0xa48   :  { %v1710_v35 = vcombine.high %v1700_v26, %v1700_v26  ;;  %v1711_v36 = vcombine.high %v1707_v27, %v1707_v27  ;;  %v1885_v37 = vrot.slane %v1700_v26, %v4540_v0  ;;  %v1889_v38 = vrot.slane %v1708_v28, %v4540_v0 }
 0xa49   :  { %v1901_v39 = vrot.slane %v1707_v27, %v4540_v0  ;;  %v1905_v40 = vrot.slane %v1709_v30, %v4540_v0  ;;  %v2046_v41 = vsel %vm1558_vm1, %v1881_v31, %v4359_v42  ;;  %v2054_v43 = vsel %vm1558_vm1, %v1897_v32, %v4359_v42 }
 0xa4a   :  { %v1893_v44 = vrot.slane %v1710_v35, %v4540_v0  ;;  %v1909_v45 = vrot.slane %v1711_v36, %v4540_v0  ;;  %v2048_v46 = vsel %vm1558_vm1, %v1885_v37, %v4359_v42  ;;  %v2050_v47 = vsel %vm1558_vm1, %v1889_v38, %v4359_v42  ;;  %2126 = vst [vmem:[%s4868_s7 + $0x100] sm:$0xff] %v2046_v41 }
 0xa4b   :  { %2134 = vst [vmem:[%s4868_s7 + $0x140] sm:$0xff] %v2054_v43  ;;  %v2056_v48 = vsel %vm1558_vm1, %v1901_v39, %v4359_v42  ;;  %v2058_v49 = vsel %vm1558_vm1, %v1905_v40, %v4359_v42  ;;  %2128 = vst [vmem:[%s4868_s7 + $0x110] sm:$0xff] %v2048_v46  ;;  %v1749_v50 = vrot.slane %v1727_v23, %v4535_v16 }
 0xa4c   :  { %2130 = vst [vmem:[%s4868_s7 + $0x120] sm:$0xff] %v2050_v47  ;;  %v1756_v51 = vrot.slane %v1728_v33, %v4535_v16  ;;  %v2052_v52 = vsel %vm1558_vm1, %v1893_v44, %v4359_v42  ;;  %v2060_v53 = vsel %vm1558_vm1, %v1909_v45, %v4359_v42  ;;  %2136 = vst [vmem:[%s4868_s7 + $0x150] sm:$0xff] %v2056_v48 }
 0xa4d   :  { %2138 = vst [vmem:[%s4868_s7 + $0x160] sm:$0xff] %v2058_v49  ;;  %v1757_v54 = vcombine.high %v1735_v24, %v1735_v24  ;;  %v1758_v55 = vcombine.high %v1742_v34, %v1742_v34  ;;  %2132 = vst [vmem:[%s4868_s7 + $0x130] sm:$0xff] %v2052_v52  ;;  %v1759_v56 = vcombine.high %v1749_v50, %v1749_v50 }
 0xa4e   :  { %2140 = vst [vmem:[%s4868_s7 + $0x170] sm:$0xff] %v2060_v53  ;;  %v1760_v57 = vcombine.high %v1756_v51, %v1756_v51  ;;  %v1913_v58 = vrot.slane %v1735_v24, %v4540_v0  ;;  %v1917_v59 = vrot.slane %v1749_v50, %v4540_v0  ;;  %v1929_v15 = vrot.slane %v1742_v34, %v4540_v0 }
 0xa4f   :  { %v1921_v60 = vrot.slane %v1757_v54, %v4540_v0  ;;  %v1933_v17 = vrot.slane %v1756_v51, %v4540_v0  ;;  %v1937_v18 = vrot.slane %v1758_v55, %v4540_v0  ;;  %v1925_v19 = vrot.slane %v1759_v56, %v4540_v0 }
 0xa50   :  { %v1941_v63 = vrot.slane %v1760_v57, %v4540_v0  ;;  %v2062_v62 = vsel %vm1558_vm1, %v1913_v58, %v4359_v42  ;;  %v2064_v20 = vsel %vm1558_vm1, %v1917_v59, %v4359_v42  ;;  %v2070_v2 = vsel %vm1558_vm1, %v1929_v15, %v4359_v42 }
 0xa51   :  { %v2066_v1 = vsel %vm1558_vm1, %v1921_v60, %v4359_v42  ;;  %v2072_v21 = vsel %vm1558_vm1, %v1933_v17, %v4359_v42  ;;  %v2074_v3 = vsel %vm1558_vm1, %v1937_v18, %v4359_v42  ;;  %2142 = vst [vmem:[%s4868_s7 + $0x180] sm:$0xff] %v2062_v62  ;;  %2144 = vst [vmem:[%s4868_s7 + $0x190] sm:$0xff] %v2064_v20 }
 0xa52   :  { %v2068_v4 = vsel %vm1558_vm1, %v1925_v19, %v4359_v42  ;;  %v2076_v29 = vsel %vm1558_vm1, %v1941_v63, %v4359_v42  ;;  %2146 = vst [vmem:[%s4868_s7 + $0x1a0] sm:$0xff] %v2066_v1  ;;  %2150 = vst [vmem:[%s4868_s7 + $0x1c0] sm:$0xff] %v2070_v2  ;;  %v1768_v5 = vrot.slane %v4670_v10, %v4535_v16 }
 0xa53   :  { %2152 = vst [vmem:[%s4868_s7 + $0x1d0] sm:$0xff] %v2072_v21  ;;  %2154 = vst [vmem:[%s4868_s7 + $0x1e0] sm:$0xff] %v2074_v3  ;;  %v1775_v6 = vrot.slane %v1761_v25, %v4535_v16 }
 0xa54   :  { %2148 = vst [vmem:[%s4868_s7 + $0x1b0] sm:$0xff] %v2068_v4  ;;  %2156 = vst [vmem:[%s4868_s7 + $0x1f0] sm:$0xff] %v2076_v29  ;;  %v1776_v7 = vcombine.high %v1768_v5, %v1768_v5  ;;  %v1784_v9 = vrot.slane %v1768_v5, %v4535_v16 }
 0xa55   :  { %v1777_v8 = vcombine.high %v1775_v6, %v1775_v6  ;;  %v1791_v11 = vrot.slane %v1775_v6, %v4535_v16 }
 0xa56   :  { %v1798_v12 = vrot.slane %v1776_v7, %v4535_v16  ;;  %v1806_v13 = vcombine.high %v1784_v9, %v1784_v9  ;;  %v1945_v22 = vrot.slane %v1784_v9, %v4540_v0 }
 0xa57   :  { %v1805_v10 = vrot.slane %v1777_v8, %v4535_v16  ;;  %v1807_v14 = vcombine.high %v1791_v11, %v1791_v11  ;;  %v1961_v23 = vrot.slane %v1791_v11, %v4540_v0 }
 0xa58   :  { %v1808_v24 = vcombine.high %v1798_v12, %v1798_v12  ;;  %v1949_v26 = vrot.slane %v1798_v12, %v4540_v0  ;;  %v1953_v27 = vrot.slane %v1806_v13, %v4540_v0  ;;  %v2078_v16 = vsel %vm1558_vm1, %v1945_v22, %v4359_v42 }
 0xa59   :  { %v1809_v25 = vcombine.high %v1805_v10, %v1805_v10  ;;  %v1965_v28 = vrot.slane %v1805_v10, %v4540_v0  ;;  %v1969_v30 = vrot.slane %v1807_v14, %v4540_v0  ;;  %v2086_v31 = vsel %vm1558_vm1, %v1961_v23, %v4359_v42  ;;  %2158 = vst [vmem:[%s4868_s7 + $0x200] sm:$0xff] %v2078_v16 }
 0xa5a   :  { %v1957_v32 = vrot.slane %v1808_v24, %v4540_v0  ;;  %v2080_v34 = vsel %vm1558_vm1, %v1949_v26, %v4359_v42  ;;  %v2082_v35 = vsel %vm1558_vm1, %v1953_v27, %v4359_v42  ;;  %2166 = vst [vmem:[%s4868_s7 + $0x240] sm:$0xff] %v2086_v31 }
 0xa5b   :  { %v1973_v33 = vrot.slane %v1809_v25, %v4540_v0  ;;  %v2088_v0 = vsel %vm1558_vm1, %v1965_v28, %v4359_v42  ;;  %v2090_v36 = vsel %vm1558_vm1, %v1969_v30, %v4359_v42  ;;  %2160 = vst [vmem:[%s4868_s7 + $0x210] sm:$0xff] %v2080_v34  ;;  %2162 = vst [vmem:[%s4868_s7 + $0x220] sm:$0xff] %v2082_v35 }
 0xa5c   :  { %v2084_v37 = vsel %vm1558_vm1, %v1957_v32, %v4359_v42  ;;  %2168 = vst [vmem:[%s4868_s7 + $0x250] sm:$0xff] %v2088_v0  ;;  %2170 = vst [vmem:[%s4868_s7 + $0x260] sm:$0xff] %v2090_v36 }
 0xa5d   :  { %v2092_v38 = vsel %vm1558_vm1, %v1973_v33, %v4359_v42  ;;  %2164 = vst [vmem:[%s4868_s7 + $0x230] sm:$0xff] %v2084_v37 }
 0xa5e   :  { %2172 = vst [vmem:[%s4868_s7 + $0x270] sm:$0xff] %v2092_v38 }

</bundles_post_ra>
